<compile_context>
chip_gen: v6e
topology: v6e:2x2x1
jax: 0.10.0
libtpu: 0.0.40
codegen_flags: <defaults>
</compile_context>

<pallas_src>
import numpy as np
import jax
import jax.numpy as jnp
from jax import lax
from jax.experimental import pallas as pl
from jax.experimental.pallas import tpu as pltpu


# ----------------------------------------------------------------------------- kernel
def make_lbs_kernel(J, TR, CH, has_offset):
    """Build the LBS kernel for a given joint count / tile geometry.

    Ref layouts (points folded onto (sublane, lane), small channel axes leading):
      a_ref    : SMEM (B, 12*J)    a[b, idx*J + j] = A[b, j, idx] (first 3 rows of 4x4)
      trans_ref: SMEM (B, 3)       per-frame global translation
      w_ref    : (J, TR, 128)      LBS weights (B-invariant)
      off_ref  : (1, J, TR, 128)   per-frame lbs_offset       [only if has_offset]
      xyz_ref  : (3, TR, 128)      gaussian positions (B-invariant, identity deformer)
      quat_ref : (4, TR, 128)      gaussian rotations wxyz (B-invariant)
      out_ref  : (1, 7, TR, 128)   rows 0-2 = transformed xyz, rows 3-6 = new quat
    """
    n_chunks = TR // CH

    def kernel(a_ref, trans_ref, w_ref, *rest):
        if has_offset:
            off_ref, xyz_ref, quat_ref, out_ref = rest
        else:
            xyz_ref, quat_ref, out_ref = rest

        b = pl.program_id(1)

        # Hoist all per-frame SMEM scalar reads (12*J + 3 sld's) out of the chunk loop.
        a = [[a_ref[b, idx * J + j] for j in range(J)] for idx in range(12)]
        tx = trans_ref[b, 0]
        ty = trans_ref[b, 1]
        tz = trans_ref[b, 2]

        # Process the TR-row tile in CH(=8)-row chunks so every temporary is exactly
        # one vreg; the big TR block only sets the DMA granularity, not the working set.
        def chunk(c, carry):
            r = pl.multiple_of(c * CH, CH)
            sl = pl.ds(r, CH)

            if has_offset:
                Wt = [w_ref[j, sl, :] + off_ref[0, j, sl, :] for j in range(J)]
            else:
                Wt = [w_ref[j, sl, :] for j in range(J)]

            # T rows (first 3 rows of the per-point 4x4), each (CH, 128):
            #   T[idx] = sum_j A[b, j, idx] * W[j]   (scalar-broadcast FMAs on the VPU)
            def t_row(idx):
                acc = a[idx][0] * Wt[0]
                for j in range(1, J):
                    acc = acc + a[idx][j] * Wt[j]
                return acc

            t00, t01, t02, t03 = t_row(0), t_row(1), t_row(2), t_row(3)
            t10, t11, t12, t13 = t_row(4), t_row(5), t_row(6), t_row(7)
            t20, t21, t22, t23 = t_row(8), t_row(9), t_row(10), t_row(11)

            # ---- homogeneous point transform + global translation ------------------
            x = xyz_ref[0, sl, :]
            y = xyz_ref[1, sl, :]
            z = xyz_ref[2, sl, :]
            ox = t00 * x + t01 * y + t02 * z + t03 + tx
            oy = t10 * x + t11 * y + t12 * z + t13 + ty
            oz = t20 * x + t21 * y + t22 * z + t23 + tz

            # ---- quaternion -> matrix (pytorch3d convention, wxyz) ------------------
            qr = quat_ref[0, sl, :]
            qi = quat_ref[1, sl, :]
            qj = quat_ref[2, sl, :]
            qk = quat_ref[3, sl, :]
            two_s = 2.0 * pl.reciprocal(qr * qr + qi * qi + qj * qj + qk * qk,
                                        approx=True)
            o00 = 1.0 - two_s * (qj * qj + qk * qk)
            o01 = two_s * (qi * qj - qk * qr)
            o02 = two_s * (qi * qk + qj * qr)
            o10 = two_s * (qi * qj + qk * qr)
            o11 = 1.0 - two_s * (qi * qi + qk * qk)
            o12 = two_s * (qj * qk - qi * qr)
            o20 = two_s * (qi * qk - qj * qr)
            o21 = two_s * (qj * qk + qi * qr)
            o22 = 1.0 - two_s * (qi * qi + qj * qj)

            # ---- compose: R_new = T[:3,:3] @ R_current (per point) ------------------
            n00 = t00 * o00 + t01 * o10 + t02 * o20
            n01 = t00 * o01 + t01 * o11 + t02 * o21
            n02 = t00 * o02 + t01 * o12 + t02 * o22
            n10 = t10 * o00 + t11 * o10 + t12 * o20
            n11 = t10 * o01 + t11 * o11 + t12 * o21
            n12 = t10 * o02 + t11 * o12 + t12 * o22
            n20 = t20 * o00 + t21 * o10 + t22 * o20
            n21 = t20 * o01 + t21 * o11 + t22 * o21
            n22 = t20 * o02 + t21 * o12 + t22 * o22

            # ---- matrix -> quaternion (pytorch3d candidate selection) ---------------
            qa0 = jnp.sqrt(jnp.maximum(1.0 + n00 + n11 + n22, 0.0))
            qa1 = jnp.sqrt(jnp.maximum(1.0 + n00 - n11 - n22, 0.0))
            qa2 = jnp.sqrt(jnp.maximum(1.0 - n00 + n11 - n22, 0.0))
            qa3 = jnp.sqrt(jnp.maximum(1.0 - n00 - n11 + n22, 0.0))
            flr = 0.1
            inv0 = 0.5 * pl.reciprocal(jnp.maximum(qa0, flr), approx=True)
            inv1 = 0.5 * pl.reciprocal(jnp.maximum(qa1, flr), approx=True)
            inv2 = 0.5 * pl.reciprocal(jnp.maximum(qa2, flr), approx=True)
            inv3 = 0.5 * pl.reciprocal(jnp.maximum(qa3, flr), approx=True)
            # >= tie-breaking matches argmax's first-max convention (do not change to >)
            is0 = (qa0 >= qa1) & (qa0 >= qa2) & (qa0 >= qa3)
            is1 = (~is0) & (qa1 >= qa2) & (qa1 >= qa3)
            is2 = (~is0) & (~is1) & (qa2 >= qa3)

            def sel(v0, v1, v2, v3):
                return jnp.where(is0, v0, jnp.where(is1, v1, jnp.where(is2, v2, v3)))

            oq0 = sel(qa0 * qa0 * inv0, (n21 - n12) * inv1,
                      (n02 - n20) * inv2, (n10 - n01) * inv3)
            oq1 = sel((n21 - n12) * inv0, qa1 * qa1 * inv1,
                      (n10 + n01) * inv2, (n02 + n20) * inv3)
            oq2 = sel((n02 - n20) * inv0, (n10 + n01) * inv1,
                      qa2 * qa2 * inv2, (n12 + n21) * inv3)
            oq3 = sel((n10 - n01) * inv0, (n02 + n20) * inv1,
                      (n12 + n21) * inv2, qa3 * qa3 * inv3)

            # ---- lane-dense merged output stores ------------------------------------
            out_ref[0, 0, sl, :] = ox
            out_ref[0, 1, sl, :] = oy
            out_ref[0, 2, sl, :] = oz
            out_ref[0, 3, sl, :] = oq0
            out_ref[0, 4, sl, :] = oq1
            out_ref[0, 5, sl, :] = oq2
            out_ref[0, 6, sl, :] = oq3
            return carry

        lax.fori_loop(0, n_chunks, chunk, 0)

    return kernel


# ---------------------------------------------------------------------------- wrapper
def lbs_transform_pallas(lbs_weights, A_flat, xyz, quat, trans, lbs_offset=None,
                         max_tile_rows=256, chunk_rows=8):
    """LBS skinning of N gaussians for B frames.

    lbs_weights: (N, J)    A_flat: (B, J, 16)    xyz: (N, 3)    quat: (N, 4)
    trans: (B, 3)          lbs_offset: (B, N, J) or None (fast path, no offset stream)
    Returns (B, N, 3) transformed xyz and (B, N, 4) new quaternions.
    """
    assert max_tile_rows % chunk_rows == 0
    B, J, _ = A_flat.shape
    N0 = xyz.shape[0]
    has_offset = lbs_offset is not None

    CH = chunk_rows
    NR_raw = -(-N0 // 128)                                 # sublane rows needed
    TR = min(max_tile_rows, -(-NR_raw // CH) * CH)         # rows/tile, multiple of CH
    NT = -(-NR_raw // TR)                                  # point tiles
    NR = NT * TR
    N = NR * 128
    pad = N - N0
    if pad:
        lbs_weights = jnp.pad(lbs_weights, ((0, pad), (0, 0)))
        xyz = jnp.pad(xyz, ((0, pad), (0, 0)))
        # keep the non-zero-norm invariant for padded quats (NaN-safe reciprocal)
        quat = jnp.pad(quat, ((0, pad), (0, 0)), constant_values=1.0)
        if has_offset:
            lbs_offset = jnp.pad(lbs_offset, ((0, 0), (0, pad), (0, 0)))

    # ---- layout plumbing: points fold onto (sublane, lane); channels small & leading.
    # xyz / quat / weights are B-invariant -> DMA'd once per point tile, never per frame.
    w_l = lbs_weights.T.reshape(J, NR, 128)
    xyz_l = xyz.T.reshape(3, NR, 128)
    quat_l = quat.T.reshape(4, NR, 128)
    # only rows 0..2 of each 4x4 are ever used (row 3 is [0,0,0,1]); SMEM scalar table
    a_red = jnp.transpose(A_flat[:, :, :12], (0, 2, 1)).reshape(B, 12 * J)
    a_red = a_red.astype(jnp.float32)
    trans_s = trans.reshape(B, 3).astype(jnp.float32)

    in_specs = [
        pl.BlockSpec(memory_space=pltpu.MemorySpace.SMEM),            # A rows (scalars)
        pl.BlockSpec(memory_space=pltpu.MemorySpace.SMEM),            # global trans
        pl.BlockSpec((J, TR, 128), lambda n, b: (0, n, 0)),           # lbs_weights
    ]
    args = [a_red, trans_s, w_l]
    if has_offset:
        # TODO(synk): the deformer should emit lbs_offset channel-major (B, J, N) so
        # this wrapper-side transpose (an extra HBM pass over the largest per-frame
        # input) disappears; it is only taken when an offset is actually provided.
        off_l = jnp.transpose(lbs_offset, (0, 2, 1)).reshape(B, J, NR, 128)
        in_specs.append(pl.BlockSpec((1, J, TR, 128), lambda n, b: (b, 0, n, 0)))
        args.append(off_l)
    in_specs += [
        pl.BlockSpec((3, TR, 128), lambda n, b: (0, n, 0)),           # xyz (B-invariant)
        pl.BlockSpec((4, TR, 128), lambda n, b: (0, n, 0)),           # quat (B-invariant)
    ]
    args += [xyz_l, quat_l]

    kernel = make_lbs_kernel(J, TR, CH, has_offset)

    out = pl.pallas_call(
        kernel,
        out_shape=jax.ShapeDtypeStruct((B, 7, NR, 128), jnp.float32),
        grid=(NT, B),  # B innermost: B-invariant blocks keep their index -> no re-DMA
        in_specs=in_specs,
        out_specs=pl.BlockSpec((1, 7, TR, 128), lambda n, b: (b, 0, n, 0)),
        compiler_params=pltpu.CompilerParams(
            # megacore split lands on the large point-tile axis, never on tiny B
            dimension_semantics=("parallel", "arbitrary"),
            vmem_limit_bytes=32 * 1024 * 1024),
    )(*args)

    # TODO(synk): a channel-major consumer could take the (B, 7, N) slab directly and
    # skip these output transposes.
    out = out.reshape(B, 7, N)
    out_xyz = jnp.transpose(out[:, 0:3, :], (0, 2, 1))[:, :N0, :]   # (B, N0, 3)
    out_quat = jnp.transpose(out[:, 3:7, :], (0, 2, 1))[:, :N0, :]  # (B, N0, 4)
    return out_xyz, out_quat


# ------------------------------------------------------------------- plain-JAX glue
def batch_rodrigues(rot_vecs, eps=1e-8):
    n = rot_vecs.shape[0]
    angle = jnp.linalg.norm(rot_vecs + eps, axis=1, keepdims=True)      # (n,1)
    rot_dir = rot_vecs / angle
    cos = jnp.cos(angle)[:, :, None]                                    # (n,1,1)
    sin = jnp.sin(angle)[:, :, None]
    rx, ry, rz = jnp.split(rot_dir, 3, axis=1)
    zeros = jnp.zeros((n, 1), dtype=rot_vecs.dtype)
    K = jnp.concatenate([zeros, -rz, ry, rz, zeros, -rx, -ry, rx, zeros],
                        axis=1).reshape(n, 3, 3)
    ident = jnp.eye(3, dtype=rot_vecs.dtype)[None]
    return ident + sin * K + (1.0 - cos) * jnp.matmul(K, K)


def transform_mat(R, t):
    Rt = jnp.concatenate([R, t], axis=2)                                # (k,3,4)
    bottom = jnp.tile(jnp.array([[[0.0, 0.0, 0.0, 1.0]]], dtype=R.dtype),
                      (R.shape[0], 1, 1))
    return jnp.concatenate([Rt, bottom], axis=1)                        # (k,4,4)


def batch_rigid_transform(rot_mats, joints, parents):
    B, Jn = joints.shape[:2]
    joints_e = joints[..., None]                                        # (B,J,3,1)
    rel_joints = joints_e.at[:, 1:].add(-joints_e[:, parents[1:]])
    tmats = transform_mat(rot_mats.reshape(-1, 3, 3),
                          rel_joints.reshape(-1, 3, 1)).reshape(B, Jn, 4, 4)
    chain = [tmats[:, 0]]
    for i in range(1, Jn):
        chain.append(jnp.matmul(chain[parents[i]], tmats[:, i]))
    transforms = jnp.stack(chain, axis=1)                               # (B,J,4,4)
    posed_joints = transforms[:, :, :3, 3]
    joints_h = jnp.concatenate(
        [joints_e, jnp.zeros((B, Jn, 1, 1), dtype=joints.dtype)], axis=2)
    tj = jnp.matmul(transforms, joints_h)                               # (B,J,4,1)
    rel_transforms = transforms - jnp.pad(tj, ((0, 0), (0, 0), (0, 0), (3, 0)))
    return posed_joints, rel_transforms


# reference quaternion helpers (same convention as the kernel)
def quaternion_to_matrix_ref(q):
    r, i, j, k = q[..., 0], q[..., 1], q[..., 2], q[..., 3]
    two_s = 2.0 / (q * q).sum(-1)
    o = jnp.stack([
        1 - two_s * (j * j + k * k), two_s * (i * j - k * r), two_s * (i * k + j * r),
        two_s * (i * j + k * r), 1 - two_s * (i * i + k * k), two_s * (j * k - i * r),
        two_s * (i * k - j * r), two_s * (j * k + i * r), 1 - two_s * (i * i + j * j)],
        axis=-1)
    return o.reshape(q.shape[:-1] + (3, 3))


def matrix_to_quaternion_ref(M):
    m00, m01, m02 = M[..., 0, 0], M[..., 0, 1], M[..., 0, 2]
    m10, m11, m12 = M[..., 1, 0], M[..., 1, 1], M[..., 1, 2]
    m20, m21, m22 = M[..., 2, 0], M[..., 2, 1], M[..., 2, 2]
    q_abs = jnp.sqrt(jnp.maximum(jnp.stack([
        1.0 + m00 + m11 + m22, 1.0 + m00 - m11 - m22,
        1.0 - m00 + m11 - m22, 1.0 - m00 - m11 + m22], axis=-1), 0.0))
    cand = jnp.stack([
        jnp.stack([q_abs[..., 0] ** 2, m21 - m12, m02 - m20, m10 - m01], -1),
        jnp.stack([m21 - m12, q_abs[..., 1] ** 2, m10 + m01, m02 + m20], -1),
        jnp.stack([m02 - m20, m10 + m01, q_abs[..., 2] ** 2, m12 + m21], -1),
        jnp.stack([m10 - m01, m02 + m20, m12 + m21, q_abs[..., 3] ** 2], -1)], -2)
    cand = cand / (2.0 * jnp.maximum(q_abs[..., None], 0.1))
    idx = jnp.argmax(q_abs, axis=-1)
    return jnp.take_along_axis(cand, idx[..., None, None], axis=-2)[..., 0, :]


def reference_lbs(W, lbs_offset, A_flat, xyz, quat, trans):
    B, J, _ = A_flat.shape
    N = xyz.shape[0]
    Wt = W[None] + lbs_offset
    T = jnp.einsum('bnj,bjk->bnk', Wt, A_flat).reshape(B, N, 4, 4)
    homog = jnp.concatenate([xyz, jnp.ones((N, 1), jnp.float32)], -1)   # (N,4)
    txyz = jnp.einsum('bnij,nj->bni', T, homog)[..., :3] + trans[:, None, :]
    Rg = T[..., :3, :3]
    Rc = quaternion_to_matrix_ref(quat)
    Rn = jnp.einsum('bnij,njk->bnik', Rg, Rc)
    qn = matrix_to_quaternion_ref(Rn)
    return txyz, qn


# -------------------------------------------------------- AnimationNet-like driver
class AnimationNetPallas:
    def __init__(self, key, num_gaussians, num_joints, num_verts, parents):
        ks = jax.random.split(key, 3)
        self.parents = parents
        self.v_template = jax.random.normal(ks[0], (num_verts, 3), jnp.float32) * 0.3
        self.J_regressor = jax.nn.softmax(
            jax.random.normal(ks[1], (num_joints, num_verts), jnp.float32), axis=-1)
        self.lbs_weights = jax.nn.softmax(
            jax.random.normal(ks[2], (num_gaussians, num_joints), jnp.float32) * 2.0,
            axis=-1)
        # joints = einsum('bik,ji->bjk', v_template[None], J_regressor)  -> (1, J, 3)
        self.joints = jnp.einsum('bik,ji->bjk', self.v_template[None], self.J_regressor)
        self.num_joints = num_joints

    def __call__(self, gaussians, poses, lbs_offset=None):
        body_pose = poses['body_pose']            # (1, B, 3*J)
        global_trans = poses['trans']             # (1, B, 3)
        poses_cat = jnp.concatenate([global_trans, body_pose], axis=-1)[0]  # (B, 3+3J)
        g_trans = poses_cat[:, :3]
        b_pose = poses_cat[:, 3:]
        B = b_pose.shape[0]
        J = self.num_joints

        # TODO(synk): GaussianDeformer is not defined in the provided source; use the
        # identity deformation (xyz shared across frames, no jnp.tile) and a
        # caller-supplied lbs_offset (None -> the kernel's no-offset fast path).
        rot_mats = batch_rodrigues(b_pose.reshape(-1, 3)).reshape(B, J, 3, 3)
        _, A = batch_rigid_transform(rot_mats, jnp.tile(self.joints, (B, 1, 1)),
                                     self.parents)
        A_flat = A.reshape(B, J, 16)

        xyz_t, quat_t = lbs_transform_pallas(self.lbs_weights, A_flat,
                                             gaussians['xyz'], gaussians['rot'],
                                             g_trans, lbs_offset=lbs_offset)

        # TODO(synk): render_avatars (Gaussian-splat rasterizer) has no Pallas
        # equivalent; return the transformed gaussians instead of rendered images.
        out = []
        for i in range(B):
            out.append({'xyz': xyz_t[i], 'rot': quat_t[i],
                        'color': gaussians['color'], 'scale': gaussians['scale'],
                        'opacity': gaussians['opacity']})
        return out, (A_flat, g_trans)


if __name__ == "__main__":
    key = jax.random.PRNGKey(0)
    J, N, V, B = 8, 1024, 32, 2          # joints, gaussians, template verts, clip_length
    parents = np.array([-1, 0, 0, 1, 2, 3, 4, 5], dtype=np.int32)

    ks = jax.random.split(key, 12)
    net = AnimationNetPallas(ks[0], N, J, V, parents)

    xyz = jax.random.normal(ks[1], (N, 3), jnp.float32) * 0.5
    quat = jax.random.normal(ks[2], (N, 4), jnp.float32)
    quat = quat / jnp.linalg.norm(quat, axis=-1, keepdims=True)
    gaussians = {
        'xyz': xyz,
        'rot': quat,
        'color': jax.random.uniform(ks[3], (N, 3), jnp.float32),
        'scale': jax.random.uniform(ks[4], (N, 3), jnp.float32),
        'opacity': jax.random.uniform(ks[5], (N, 1), jnp.float32),
    }
    poses = {
        'body_pose': jax.random.normal(ks[6], (1, B, 3 * J), jnp.float32) * 0.3,
        'trans': jax.random.normal(ks[7], (1, B, 3), jnp.float32) * 0.1,
    }

    # ---- test 1: driver with no lbs_offset -> no-offset fast path ------------------
    out, (A_flat, g_trans) = net(gaussians, poses, lbs_offset=None)
    xyz_k = jnp.stack([o['xyz'] for o in out])
    quat_k = jnp.stack([o['rot'] for o in out])
    jax.block_until_ready((xyz_k, quat_k))
    zero_off = jnp.zeros((B, N, J), jnp.float32)
    xyz_r, quat_r = reference_lbs(net.lbs_weights, zero_off, A_flat, xyz, quat, g_trans)
    np.testing.assert_allclose(np.asarray(xyz_k), np.asarray(xyz_r), rtol=2e-2, atol=2e-2)
    np.testing.assert_allclose(np.asarray(quat_k), np.asarray(quat_r), rtol=2e-2, atol=2e-2)

    # ---- test 2: driver with a non-zero lbs_offset -> full path --------------------
    lbs_offset = jax.random.normal(ks[8], (B, N, J), jnp.float32) * 0.01
    out2, (A_flat2, g_trans2) = net(gaussians, poses, lbs_offset=lbs_offset)
    xyz_k2 = jnp.stack([o['xyz'] for o in out2])
    quat_k2 = jnp.stack([o['rot'] for o in out2])
    jax.block_until_ready((xyz_k2, quat_k2))
    xyz_r2, quat_r2 = reference_lbs(net.lbs_weights, lbs_offset, A_flat2, xyz, quat,
                                    g_trans2)
    np.testing.assert_allclose(np.asarray(xyz_k2), np.asarray(xyz_r2), rtol=2e-2, atol=2e-2)
    np.testing.assert_allclose(np.asarray(quat_k2), np.asarray(quat_r2), rtol=2e-2, atol=2e-2)

    # ---- test 3: non-multiple-of-128 point count, multi-tile grid, multi-chunk loop --
    N3 = 2500
    w3 = jax.nn.softmax(jax.random.normal(ks[9], (N3, J), jnp.float32) * 2.0, axis=-1)
    xyz3 = jax.random.normal(ks[10], (N3, 3), jnp.float32) * 0.5
    quat3 = jax.random.normal(ks[11], (N3, 4), jnp.float32)
    quat3 = quat3 / jnp.linalg.norm(quat3, axis=-1, keepdims=True)
    off3 = jax.random.normal(ks[8], (B, N3, J), jnp.float32) * 0.01
    xyz_k3, quat_k3 = lbs_transform_pallas(w3, A_flat, xyz3, quat3, g_trans,
                                           lbs_offset=off3, max_tile_rows=16)
    jax.block_until_ready((xyz_k3, quat_k3))
    xyz_r3, quat_r3 = reference_lbs(w3, off3, A_flat, xyz3, quat3, g_trans)
    np.testing.assert_allclose(np.asarray(xyz_k3), np.asarray(xyz_r3), rtol=2e-2, atol=2e-2)
    np.testing.assert_allclose(np.asarray(quat_k3), np.asarray(quat_r3), rtol=2e-2, atol=2e-2)

    print("KERNEL_OK")
</pallas_src>

<mosaic_0001>
module attributes {stable_mosaic.version = 11 : i64} {
  func.func @kernel(%arg0: i32, %arg1: i32, %arg2: memref<2x96xf32, #tpu.memory_space<smem>>, %arg3: memref<2x3xf32, #tpu.memory_space<smem>>, %arg4: memref<8x8x128xf32, #tpu.memory_space<vmem>>, %arg5: memref<3x8x128xf32, #tpu.memory_space<vmem>>, %arg6: memref<4x8x128xf32, #tpu.memory_space<vmem>>, %arg7: memref<1x7x8x128xf32, #tpu.memory_space<vmem>>) attributes {dimension_semantics = [#tpu.dimension_semantics<parallel>, #tpu.dimension_semantics<arbitrary>], iteration_bounds = array<i64: 1, 2>, scalar_prefetch = 0 : i64, scratch_operands = 0 : i64, tpu.core_type = #tpu.core_type<tc>, window_params = [{transform_indices = @transform_0, window_bounds = array<i64: 2, 96>}, {transform_indices = @transform_1, window_bounds = array<i64: 2, 3>}, {transform_indices = @transform_2, window_bounds = array<i64: 8, 8, 128>}, {transform_indices = @transform_3, window_bounds = array<i64: 3, 8, 128>}, {transform_indices = @transform_4, window_bounds = array<i64: 4, 8, 128>}, {transform_indices = @transform_5, window_bounds = array<i64: 1, 7, 8, 128>}]} {
    %0 = arith.index_cast %arg1 : i32 to index
    %c0 = arith.constant 0 : index
    %1 = memref.load %arg2[%0, %c0] : memref<2x96xf32, #tpu.memory_space<smem>>
    %2 = arith.index_cast %arg1 : i32 to index
    %c1 = arith.constant 1 : index
    %3 = memref.load %arg2[%2, %c1] : memref<2x96xf32, #tpu.memory_space<smem>>
    %4 = arith.index_cast %arg1 : i32 to index
    %c2 = arith.constant 2 : index
    %5 = memref.load %arg2[%4, %c2] : memref<2x96xf32, #tpu.memory_space<smem>>
    %6 = arith.index_cast %arg1 : i32 to index
    %c3 = arith.constant 3 : index
    %7 = memref.load %arg2[%6, %c3] : memref<2x96xf32, #tpu.memory_space<smem>>
    %8 = arith.index_cast %arg1 : i32 to index
    %c4 = arith.constant 4 : index
    %9 = memref.load %arg2[%8, %c4] : memref<2x96xf32, #tpu.memory_space<smem>>
    %10 = arith.index_cast %arg1 : i32 to index
    %c5 = arith.constant 5 : index
    %11 = memref.load %arg2[%10, %c5] : memref<2x96xf32, #tpu.memory_space<smem>>
    %12 = arith.index_cast %arg1 : i32 to index
    %c6 = arith.constant 6 : index
    %13 = memref.load %arg2[%12, %c6] : memref<2x96xf32, #tpu.memory_space<smem>>
    %14 = arith.index_cast %arg1 : i32 to index
    %c7 = arith.constant 7 : index
    %15 = memref.load %arg2[%14, %c7] : memref<2x96xf32, #tpu.memory_space<smem>>
    %16 = arith.index_cast %arg1 : i32 to index
    %c8 = arith.constant 8 : index
    %17 = memref.load %arg2[%16, %c8] : memref<2x96xf32, #tpu.memory_space<smem>>
    %18 = arith.index_cast %arg1 : i32 to index
    %c9 = arith.constant 9 : index
    %19 = memref.load %arg2[%18, %c9] : memref<2x96xf32, #tpu.memory_space<smem>>
    %20 = arith.index_cast %arg1 : i32 to index
    %c10 = arith.constant 10 : index
    %21 = memref.load %arg2[%20, %c10] : memref<2x96xf32, #tpu.memory_space<smem>>
    %22 = arith.index_cast %arg1 : i32 to index
    %c11 = arith.constant 11 : index
    %23 = memref.load %arg2[%22, %c11] : memref<2x96xf32, #tpu.memory_space<smem>>
    %24 = arith.index_cast %arg1 : i32 to index
    %c12 = arith.constant 12 : index
    %25 = memref.load %arg2[%24, %c12] : memref<2x96xf32, #tpu.memory_space<smem>>
    %26 = arith.index_cast %arg1 : i32 to index
    %c13 = arith.constant 13 : index
    %27 = memref.load %arg2[%26, %c13] : memref<2x96xf32, #tpu.memory_space<smem>>
    %28 = arith.index_cast %arg1 : i32 to index
    %c14 = arith.constant 14 : index
    %29 = memref.load %arg2[%28, %c14] : memref<2x96xf32, #tpu.memory_space<smem>>
    %30 = arith.index_cast %arg1 : i32 to index
    %c15 = arith.constant 15 : index
    %31 = memref.load %arg2[%30, %c15] : memref<2x96xf32, #tpu.memory_space<smem>>
    %32 = arith.index_cast %arg1 : i32 to index
    %c16 = arith.constant 16 : index
    %33 = memref.load %arg2[%32, %c16] : memref<2x96xf32, #tpu.memory_space<smem>>
    %34 = arith.index_cast %arg1 : i32 to index
    %c17 = arith.constant 17 : index
    %35 = memref.load %arg2[%34, %c17] : memref<2x96xf32, #tpu.memory_space<smem>>
    %36 = arith.index_cast %arg1 : i32 to index
    %c18 = arith.constant 18 : index
    %37 = memref.load %arg2[%36, %c18] : memref<2x96xf32, #tpu.memory_space<smem>>
    %38 = arith.index_cast %arg1 : i32 to index
    %c19 = arith.constant 19 : index
    %39 = memref.load %arg2[%38, %c19] : memref<2x96xf32, #tpu.memory_space<smem>>
    %40 = arith.index_cast %arg1 : i32 to index
    %c20 = arith.constant 20 : index
    %41 = memref.load %arg2[%40, %c20] : memref<2x96xf32, #tpu.memory_space<smem>>
    %42 = arith.index_cast %arg1 : i32 to index
    %c21 = arith.constant 21 : index
    %43 = memref.load %arg2[%42, %c21] : memref<2x96xf32, #tpu.memory_space<smem>>
    %44 = arith.index_cast %arg1 : i32 to index
    %c22 = arith.constant 22 : index
    %45 = memref.load %arg2[%44, %c22] : memref<2x96xf32, #tpu.memory_space<smem>>
    %46 = arith.index_cast %arg1 : i32 to index
    %c23 = arith.constant 23 : index
    %47 = memref.load %arg2[%46, %c23] : memref<2x96xf32, #tpu.memory_space<smem>>
    %48 = arith.index_cast %arg1 : i32 to index
    %c24 = arith.constant 24 : index
    %49 = memref.load %arg2[%48, %c24] : memref<2x96xf32, #tpu.memory_space<smem>>
    %50 = arith.index_cast %arg1 : i32 to index
    %c25 = arith.constant 25 : index
    %51 = memref.load %arg2[%50, %c25] : memref<2x96xf32, #tpu.memory_space<smem>>
    %52 = arith.index_cast %arg1 : i32 to index
    %c26 = arith.constant 26 : index
    %53 = memref.load %arg2[%52, %c26] : memref<2x96xf32, #tpu.memory_space<smem>>
    %54 = arith.index_cast %arg1 : i32 to index
    %c27 = arith.constant 27 : index
    %55 = memref.load %arg2[%54, %c27] : memref<2x96xf32, #tpu.memory_space<smem>>
    %56 = arith.index_cast %arg1 : i32 to index
    %c28 = arith.constant 28 : index
    %57 = memref.load %arg2[%56, %c28] : memref<2x96xf32, #tpu.memory_space<smem>>
    %58 = arith.index_cast %arg1 : i32 to index
    %c29 = arith.constant 29 : index
    %59 = memref.load %arg2[%58, %c29] : memref<2x96xf32, #tpu.memory_space<smem>>
    %60 = arith.index_cast %arg1 : i32 to index
    %c30 = arith.constant 30 : index
    %61 = memref.load %arg2[%60, %c30] : memref<2x96xf32, #tpu.memory_space<smem>>
    %62 = arith.index_cast %arg1 : i32 to index
    %c31 = arith.constant 31 : index
    %63 = memref.load %arg2[%62, %c31] : memref<2x96xf32, #tpu.memory_space<smem>>
    %64 = arith.index_cast %arg1 : i32 to index
    %c32 = arith.constant 32 : index
    %65 = memref.load %arg2[%64, %c32] : memref<2x96xf32, #tpu.memory_space<smem>>
    %66 = arith.index_cast %arg1 : i32 to index
    %c33 = arith.constant 33 : index
    %67 = memref.load %arg2[%66, %c33] : memref<2x96xf32, #tpu.memory_space<smem>>
    %68 = arith.index_cast %arg1 : i32 to index
    %c34 = arith.constant 34 : index
    %69 = memref.load %arg2[%68, %c34] : memref<2x96xf32, #tpu.memory_space<smem>>
    %70 = arith.index_cast %arg1 : i32 to index
    %c35 = arith.constant 35 : index
    %71 = memref.load %arg2[%70, %c35] : memref<2x96xf32, #tpu.memory_space<smem>>
    %72 = arith.index_cast %arg1 : i32 to index
    %c36 = arith.constant 36 : index
    %73 = memref.load %arg2[%72, %c36] : memref<2x96xf32, #tpu.memory_space<smem>>
    %74 = arith.index_cast %arg1 : i32 to index
    %c37 = arith.constant 37 : index
    %75 = memref.load %arg2[%74, %c37] : memref<2x96xf32, #tpu.memory_space<smem>>
    %76 = arith.index_cast %arg1 : i32 to index
    %c38 = arith.constant 38 : index
    %77 = memref.load %arg2[%76, %c38] : memref<2x96xf32, #tpu.memory_space<smem>>
    %78 = arith.index_cast %arg1 : i32 to index
    %c39 = arith.constant 39 : index
    %79 = memref.load %arg2[%78, %c39] : memref<2x96xf32, #tpu.memory_space<smem>>
    %80 = arith.index_cast %arg1 : i32 to index
    %c40 = arith.constant 40 : index
    %81 = memref.load %arg2[%80, %c40] : memref<2x96xf32, #tpu.memory_space<smem>>
    %82 = arith.index_cast %arg1 : i32 to index
    %c41 = arith.constant 41 : index
    %83 = memref.load %arg2[%82, %c41] : memref<2x96xf32, #tpu.memory_space<smem>>
    %84 = arith.index_cast %arg1 : i32 to index
    %c42 = arith.constant 42 : index
    %85 = memref.load %arg2[%84, %c42] : memref<2x96xf32, #tpu.memory_space<smem>>
    %86 = arith.index_cast %arg1 : i32 to index
    %c43 = arith.constant 43 : index
    %87 = memref.load %arg2[%86, %c43] : memref<2x96xf32, #tpu.memory_space<smem>>
    %88 = arith.index_cast %arg1 : i32 to index
    %c44 = arith.constant 44 : index
    %89 = memref.load %arg2[%88, %c44] : memref<2x96xf32, #tpu.memory_space<smem>>
    %90 = arith.index_cast %arg1 : i32 to index
    %c45 = arith.constant 45 : index
    %91 = memref.load %arg2[%90, %c45] : memref<2x96xf32, #tpu.memory_space<smem>>
    %92 = arith.index_cast %arg1 : i32 to index
    %c46 = arith.constant 46 : index
    %93 = memref.load %arg2[%92, %c46] : memref<2x96xf32, #tpu.memory_space<smem>>
    %94 = arith.index_cast %arg1 : i32 to index
    %c47 = arith.constant 47 : index
    %95 = memref.load %arg2[%94, %c47] : memref<2x96xf32, #tpu.memory_space<smem>>
    %96 = arith.index_cast %arg1 : i32 to index
    %c48 = arith.constant 48 : index
    %97 = memref.load %arg2[%96, %c48] : memref<2x96xf32, #tpu.memory_space<smem>>
    %98 = arith.index_cast %arg1 : i32 to index
    %c49 = arith.constant 49 : index
    %99 = memref.load %arg2[%98, %c49] : memref<2x96xf32, #tpu.memory_space<smem>>
    %100 = arith.index_cast %arg1 : i32 to index
    %c50 = arith.constant 50 : index
    %101 = memref.load %arg2[%100, %c50] : memref<2x96xf32, #tpu.memory_space<smem>>
    %102 = arith.index_cast %arg1 : i32 to index
    %c51 = arith.constant 51 : index
    %103 = memref.load %arg2[%102, %c51] : memref<2x96xf32, #tpu.memory_space<smem>>
    %104 = arith.index_cast %arg1 : i32 to index
    %c52 = arith.constant 52 : index
    %105 = memref.load %arg2[%104, %c52] : memref<2x96xf32, #tpu.memory_space<smem>>
    %106 = arith.index_cast %arg1 : i32 to index
    %c53 = arith.constant 53 : index
    %107 = memref.load %arg2[%106, %c53] : memref<2x96xf32, #tpu.memory_space<smem>>
    %108 = arith.index_cast %arg1 : i32 to index
    %c54 = arith.constant 54 : index
    %109 = memref.load %arg2[%108, %c54] : memref<2x96xf32, #tpu.memory_space<smem>>
    %110 = arith.index_cast %arg1 : i32 to index
    %c55 = arith.constant 55 : index
    %111 = memref.load %arg2[%110, %c55] : memref<2x96xf32, #tpu.memory_space<smem>>
    %112 = arith.index_cast %arg1 : i32 to index
    %c56 = arith.constant 56 : index
    %113 = memref.load %arg2[%112, %c56] : memref<2x96xf32, #tpu.memory_space<smem>>
    %114 = arith.index_cast %arg1 : i32 to index
    %c57 = arith.constant 57 : index
    %115 = memref.load %arg2[%114, %c57] : memref<2x96xf32, #tpu.memory_space<smem>>
    %116 = arith.index_cast %arg1 : i32 to index
    %c58 = arith.constant 58 : index
    %117 = memref.load %arg2[%116, %c58] : memref<2x96xf32, #tpu.memory_space<smem>>
    %118 = arith.index_cast %arg1 : i32 to index
    %c59 = arith.constant 59 : index
    %119 = memref.load %arg2[%118, %c59] : memref<2x96xf32, #tpu.memory_space<smem>>
    %120 = arith.index_cast %arg1 : i32 to index
    %c60 = arith.constant 60 : index
    %121 = memref.load %arg2[%120, %c60] : memref<2x96xf32, #tpu.memory_space<smem>>
    %122 = arith.index_cast %arg1 : i32 to index
    %c61 = arith.constant 61 : index
    %123 = memref.load %arg2[%122, %c61] : memref<2x96xf32, #tpu.memory_space<smem>>
    %124 = arith.index_cast %arg1 : i32 to index
    %c62 = arith.constant 62 : index
    %125 = memref.load %arg2[%124, %c62] : memref<2x96xf32, #tpu.memory_space<smem>>
    %126 = arith.index_cast %arg1 : i32 to index
    %c63 = arith.constant 63 : index
    %127 = memref.load %arg2[%126, %c63] : memref<2x96xf32, #tpu.memory_space<smem>>
    %128 = arith.index_cast %arg1 : i32 to index
    %c64 = arith.constant 64 : index
    %129 = memref.load %arg2[%128, %c64] : memref<2x96xf32, #tpu.memory_space<smem>>
    %130 = arith.index_cast %arg1 : i32 to index
    %c65 = arith.constant 65 : index
    %131 = memref.load %arg2[%130, %c65] : memref<2x96xf32, #tpu.memory_space<smem>>
    %132 = arith.index_cast %arg1 : i32 to index
    %c66 = arith.constant 66 : index
    %133 = memref.load %arg2[%132, %c66] : memref<2x96xf32, #tpu.memory_space<smem>>
    %134 = arith.index_cast %arg1 : i32 to index
    %c67 = arith.constant 67 : index
    %135 = memref.load %arg2[%134, %c67] : memref<2x96xf32, #tpu.memory_space<smem>>
    %136 = arith.index_cast %arg1 : i32 to index
    %c68 = arith.constant 68 : index
    %137 = memref.load %arg2[%136, %c68] : memref<2x96xf32, #tpu.memory_space<smem>>
    %138 = arith.index_cast %arg1 : i32 to index
    %c69 = arith.constant 69 : index
    %139 = memref.load %arg2[%138, %c69] : memref<2x96xf32, #tpu.memory_space<smem>>
    %140 = arith.index_cast %arg1 : i32 to index
    %c70 = arith.constant 70 : index
    %141 = memref.load %arg2[%140, %c70] : memref<2x96xf32, #tpu.memory_space<smem>>
    %142 = arith.index_cast %arg1 : i32 to index
    %c71 = arith.constant 71 : index
    %143 = memref.load %arg2[%142, %c71] : memref<2x96xf32, #tpu.memory_space<smem>>
    %144 = arith.index_cast %arg1 : i32 to index
    %c72 = arith.constant 72 : index
    %145 = memref.load %arg2[%144, %c72] : memref<2x96xf32, #tpu.memory_space<smem>>
    %146 = arith.index_cast %arg1 : i32 to index
    %c73 = arith.constant 73 : index
    %147 = memref.load %arg2[%146, %c73] : memref<2x96xf32, #tpu.memory_space<smem>>
    %148 = arith.index_cast %arg1 : i32 to index
    %c74 = arith.constant 74 : index
    %149 = memref.load %arg2[%148, %c74] : memref<2x96xf32, #tpu.memory_space<smem>>
    %150 = arith.index_cast %arg1 : i32 to index
    %c75 = arith.constant 75 : index
    %151 = memref.load %arg2[%150, %c75] : memref<2x96xf32, #tpu.memory_space<smem>>
    %152 = arith.index_cast %arg1 : i32 to index
    %c76 = arith.constant 76 : index
    %153 = memref.load %arg2[%152, %c76] : memref<2x96xf32, #tpu.memory_space<smem>>
    %154 = arith.index_cast %arg1 : i32 to index
    %c77 = arith.constant 77 : index
    %155 = memref.load %arg2[%154, %c77] : memref<2x96xf32, #tpu.memory_space<smem>>
    %156 = arith.index_cast %arg1 : i32 to index
    %c78 = arith.constant 78 : index
    %157 = memref.load %arg2[%156, %c78] : memref<2x96xf32, #tpu.memory_space<smem>>
    %158 = arith.index_cast %arg1 : i32 to index
    %c79 = arith.constant 79 : index
    %159 = memref.load %arg2[%158, %c79] : memref<2x96xf32, #tpu.memory_space<smem>>
    %160 = arith.index_cast %arg1 : i32 to index
    %c80 = arith.constant 80 : index
    %161 = memref.load %arg2[%160, %c80] : memref<2x96xf32, #tpu.memory_space<smem>>
    %162 = arith.index_cast %arg1 : i32 to index
    %c81 = arith.constant 81 : index
    %163 = memref.load %arg2[%162, %c81] : memref<2x96xf32, #tpu.memory_space<smem>>
    %164 = arith.index_cast %arg1 : i32 to index
    %c82 = arith.constant 82 : index
    %165 = memref.load %arg2[%164, %c82] : memref<2x96xf32, #tpu.memory_space<smem>>
    %166 = arith.index_cast %arg1 : i32 to index
    %c83 = arith.constant 83 : index
    %167 = memref.load %arg2[%166, %c83] : memref<2x96xf32, #tpu.memory_space<smem>>
    %168 = arith.index_cast %arg1 : i32 to index
    %c84 = arith.constant 84 : index
    %169 = memref.load %arg2[%168, %c84] : memref<2x96xf32, #tpu.memory_space<smem>>
    %170 = arith.index_cast %arg1 : i32 to index
    %c85 = arith.constant 85 : index
    %171 = memref.load %arg2[%170, %c85] : memref<2x96xf32, #tpu.memory_space<smem>>
    %172 = arith.index_cast %arg1 : i32 to index
    %c86 = arith.constant 86 : index
    %173 = memref.load %arg2[%172, %c86] : memref<2x96xf32, #tpu.memory_space<smem>>
    %174 = arith.index_cast %arg1 : i32 to index
    %c87 = arith.constant 87 : index
    %175 = memref.load %arg2[%174, %c87] : memref<2x96xf32, #tpu.memory_space<smem>>
    %176 = arith.index_cast %arg1 : i32 to index
    %c88 = arith.constant 88 : index
    %177 = memref.load %arg2[%176, %c88] : memref<2x96xf32, #tpu.memory_space<smem>>
    %178 = arith.index_cast %arg1 : i32 to index
    %c89 = arith.constant 89 : index
    %179 = memref.load %arg2[%178, %c89] : memref<2x96xf32, #tpu.memory_space<smem>>
    %180 = arith.index_cast %arg1 : i32 to index
    %c90 = arith.constant 90 : index
    %181 = memref.load %arg2[%180, %c90] : memref<2x96xf32, #tpu.memory_space<smem>>
    %182 = arith.index_cast %arg1 : i32 to index
    %c91 = arith.constant 91 : index
    %183 = memref.load %arg2[%182, %c91] : memref<2x96xf32, #tpu.memory_space<smem>>
    %184 = arith.index_cast %arg1 : i32 to index
    %c92 = arith.constant 92 : index
    %185 = memref.load %arg2[%184, %c92] : memref<2x96xf32, #tpu.memory_space<smem>>
    %186 = arith.index_cast %arg1 : i32 to index
    %c93 = arith.constant 93 : index
    %187 = memref.load %arg2[%186, %c93] : memref<2x96xf32, #tpu.memory_space<smem>>
    %188 = arith.index_cast %arg1 : i32 to index
    %c94 = arith.constant 94 : index
    %189 = memref.load %arg2[%188, %c94] : memref<2x96xf32, #tpu.memory_space<smem>>
    %190 = arith.index_cast %arg1 : i32 to index
    %c95 = arith.constant 95 : index
    %191 = memref.load %arg2[%190, %c95] : memref<2x96xf32, #tpu.memory_space<smem>>
    %192 = arith.index_cast %arg1 : i32 to index
    %c0_0 = arith.constant 0 : index
    %193 = memref.load %arg3[%192, %c0_0] : memref<2x3xf32, #tpu.memory_space<smem>>
    %194 = arith.index_cast %arg1 : i32 to index
    %c1_1 = arith.constant 1 : index
    %195 = memref.load %arg3[%194, %c1_1] : memref<2x3xf32, #tpu.memory_space<smem>>
    %196 = arith.index_cast %arg1 : i32 to index
    %c2_2 = arith.constant 2 : index
    %197 = memref.load %arg3[%196, %c2_2] : memref<2x3xf32, #tpu.memory_space<smem>>
    %c0_i32 = arith.constant 0 : i32
    %c8_i32 = arith.constant 8 : i32
    %198 = arith.muli %c0_i32, %c8_i32 : i32
    %199 = tpu.assume_multiple %198, 8 : i32
    %c0_3 = arith.constant 0 : index
    %200 = arith.index_cast %199 : i32 to index
    %c0_4 = arith.constant 0 : index
    %201 = vector.load %arg4[%c0_3, %200, %c0_4] : memref<8x8x128xf32, #tpu.memory_space<vmem>>, vector<1x8x128xf32>
    %202 = vector.shape_cast %201 : vector<1x8x128xf32> to vector<8x128xf32>
    %c1_5 = arith.constant 1 : index
    %203 = arith.index_cast %199 : i32 to index
    %c0_6 = arith.constant 0 : index
    %204 = vector.load %arg4[%c1_5, %203, %c0_6] : memref<8x8x128xf32, #tpu.memory_space<vmem>>, vector<1x8x128xf32>
    %205 = vector.shape_cast %204 : vector<1x8x128xf32> to vector<8x128xf32>
    %c2_7 = arith.constant 2 : index
    %206 = arith.index_cast %199 : i32 to index
    %c0_8 = arith.constant 0 : index
    %207 = vector.load %arg4[%c2_7, %206, %c0_8] : memref<8x8x128xf32, #tpu.memory_space<vmem>>, vector<1x8x128xf32>
    %208 = vector.shape_cast %207 : vector<1x8x128xf32> to vector<8x128xf32>
    %c3_9 = arith.constant 3 : index
    %209 = arith.index_cast %199 : i32 to index
    %c0_10 = arith.constant 0 : index
    %210 = vector.load %arg4[%c3_9, %209, %c0_10] : memref<8x8x128xf32, #tpu.memory_space<vmem>>, vector<1x8x128xf32>
    %211 = vector.shape_cast %210 : vector<1x8x128xf32> to vector<8x128xf32>
    %c4_11 = arith.constant 4 : index
    %212 = arith.index_cast %199 : i32 to index
    %c0_12 = arith.constant 0 : index
    %213 = vector.load %arg4[%c4_11, %212, %c0_12] : memref<8x8x128xf32, #tpu.memory_space<vmem>>, vector<1x8x128xf32>
    %214 = vector.shape_cast %213 : vector<1x8x128xf32> to vector<8x128xf32>
    %c5_13 = arith.constant 5 : index
    %215 = arith.index_cast %199 : i32 to index
    %c0_14 = arith.constant 0 : index
    %216 = vector.load %arg4[%c5_13, %215, %c0_14] : memref<8x8x128xf32, #tpu.memory_space<vmem>>, vector<1x8x128xf32>
    %217 = vector.shape_cast %216 : vector<1x8x128xf32> to vector<8x128xf32>
    %c6_15 = arith.constant 6 : index
    %218 = arith.index_cast %199 : i32 to index
    %c0_16 = arith.constant 0 : index
    %219 = vector.load %arg4[%c6_15, %218, %c0_16] : memref<8x8x128xf32, #tpu.memory_space<vmem>>, vector<1x8x128xf32>
    %220 = vector.shape_cast %219 : vector<1x8x128xf32> to vector<8x128xf32>
    %c7_17 = arith.constant 7 : index
    %221 = arith.index_cast %199 : i32 to index
    %c0_18 = arith.constant 0 : index
    %222 = vector.load %arg4[%c7_17, %221, %c0_18] : memref<8x8x128xf32, #tpu.memory_space<vmem>>, vector<1x8x128xf32>
    %223 = vector.shape_cast %222 : vector<1x8x128xf32> to vector<8x128xf32>
    %224 = vector.broadcast %1 : f32 to vector<8x128xf32>
    %225 = arith.mulf %224, %202 : vector<8x128xf32>
    %226 = vector.broadcast %3 : f32 to vector<8x128xf32>
    %227 = arith.mulf %226, %205 : vector<8x128xf32>
    %228 = arith.addf %225, %227 : vector<8x128xf32>
    %229 = vector.broadcast %5 : f32 to vector<8x128xf32>
    %230 = arith.mulf %229, %208 : vector<8x128xf32>
    %231 = arith.addf %228, %230 : vector<8x128xf32>
    %232 = vector.broadcast %7 : f32 to vector<8x128xf32>
    %233 = arith.mulf %232, %211 : vector<8x128xf32>
    %234 = arith.addf %231, %233 : vector<8x128xf32>
    %235 = vector.broadcast %9 : f32 to vector<8x128xf32>
    %236 = arith.mulf %235, %214 : vector<8x128xf32>
    %237 = arith.addf %234, %236 : vector<8x128xf32>
    %238 = vector.broadcast %11 : f32 to vector<8x128xf32>
    %239 = arith.mulf %238, %217 : vector<8x128xf32>
    %240 = arith.addf %237, %239 : vector<8x128xf32>
    %241 = vector.broadcast %13 : f32 to vector<8x128xf32>
    %242 = arith.mulf %241, %220 : vector<8x128xf32>
    %243 = arith.addf %240, %242 : vector<8x128xf32>
    %244 = vector.broadcast %15 : f32 to vector<8x128xf32>
    %245 = arith.mulf %244, %223 : vector<8x128xf32>
    %246 = arith.addf %243, %245 : vector<8x128xf32>
    %247 = vector.broadcast %17 : f32 to vector<8x128xf32>
    %248 = arith.mulf %247, %202 : vector<8x128xf32>
    %249 = vector.broadcast %19 : f32 to vector<8x128xf32>
    %250 = arith.mulf %249, %205 : vector<8x128xf32>
    %251 = arith.addf %248, %250 : vector<8x128xf32>
    %252 = vector.broadcast %21 : f32 to vector<8x128xf32>
    %253 = arith.mulf %252, %208 : vector<8x128xf32>
    %254 = arith.addf %251, %253 : vector<8x128xf32>
    %255 = vector.broadcast %23 : f32 to vector<8x128xf32>
    %256 = arith.mulf %255, %211 : vector<8x128xf32>
    %257 = arith.addf %254, %256 : vector<8x128xf32>
    %258 = vector.broadcast %25 : f32 to vector<8x128xf32>
    %259 = arith.mulf %258, %214 : vector<8x128xf32>
    %260 = arith.addf %257, %259 : vector<8x128xf32>
    %261 = vector.broadcast %27 : f32 to vector<8x128xf32>
    %262 = arith.mulf %261, %217 : vector<8x128xf32>
    %263 = arith.addf %260, %262 : vector<8x128xf32>
    %264 = vector.broadcast %29 : f32 to vector<8x128xf32>
    %265 = arith.mulf %264, %220 : vector<8x128xf32>
    %266 = arith.addf %263, %265 : vector<8x128xf32>
    %267 = vector.broadcast %31 : f32 to vector<8x128xf32>
    %268 = arith.mulf %267, %223 : vector<8x128xf32>
    %269 = arith.addf %266, %268 : vector<8x128xf32>
    %270 = vector.broadcast %33 : f32 to vector<8x128xf32>
    %271 = arith.mulf %270, %202 : vector<8x128xf32>
    %272 = vector.broadcast %35 : f32 to vector<8x128xf32>
    %273 = arith.mulf %272, %205 : vector<8x128xf32>
    %274 = arith.addf %271, %273 : vector<8x128xf32>
    %275 = vector.broadcast %37 : f32 to vector<8x128xf32>
    %276 = arith.mulf %275, %208 : vector<8x128xf32>
    %277 = arith.addf %274, %276 : vector<8x128xf32>
    %278 = vector.broadcast %39 : f32 to vector<8x128xf32>
    %279 = arith.mulf %278, %211 : vector<8x128xf32>
    %280 = arith.addf %277, %279 : vector<8x128xf32>
    %281 = vector.broadcast %41 : f32 to vector<8x128xf32>
    %282 = arith.mulf %281, %214 : vector<8x128xf32>
    %283 = arith.addf %280, %282 : vector<8x128xf32>
    %284 = vector.broadcast %43 : f32 to vector<8x128xf32>
    %285 = arith.mulf %284, %217 : vector<8x128xf32>
    %286 = arith.addf %283, %285 : vector<8x128xf32>
    %287 = vector.broadcast %45 : f32 to vector<8x128xf32>
    %288 = arith.mulf %287, %220 : vector<8x128xf32>
    %289 = arith.addf %286, %288 : vector<8x128xf32>
    %290 = vector.broadcast %47 : f32 to vector<8x128xf32>
    %291 = arith.mulf %290, %223 : vector<8x128xf32>
    %292 = arith.addf %289, %291 : vector<8x128xf32>
    %293 = vector.broadcast %49 : f32 to vector<8x128xf32>
    %294 = arith.mulf %293, %202 : vector<8x128xf32>
    %295 = vector.broadcast %51 : f32 to vector<8x128xf32>
    %296 = arith.mulf %295, %205 : vector<8x128xf32>
    %297 = arith.addf %294, %296 : vector<8x128xf32>
    %298 = vector.broadcast %53 : f32 to vector<8x128xf32>
    %299 = arith.mulf %298, %208 : vector<8x128xf32>
    %300 = arith.addf %297, %299 : vector<8x128xf32>
    %301 = vector.broadcast %55 : f32 to vector<8x128xf32>
    %302 = arith.mulf %301, %211 : vector<8x128xf32>
    %303 = arith.addf %300, %302 : vector<8x128xf32>
    %304 = vector.broadcast %57 : f32 to vector<8x128xf32>
    %305 = arith.mulf %304, %214 : vector<8x128xf32>
    %306 = arith.addf %303, %305 : vector<8x128xf32>
    %307 = vector.broadcast %59 : f32 to vector<8x128xf32>
    %308 = arith.mulf %307, %217 : vector<8x128xf32>
    %309 = arith.addf %306, %308 : vector<8x128xf32>
    %310 = vector.broadcast %61 : f32 to vector<8x128xf32>
    %311 = arith.mulf %310, %220 : vector<8x128xf32>
    %312 = arith.addf %309, %311 : vector<8x128xf32>
    %313 = vector.broadcast %63 : f32 to vector<8x128xf32>
    %314 = arith.mulf %313, %223 : vector<8x128xf32>
    %315 = arith.addf %312, %314 : vector<8x128xf32>
    %316 = vector.broadcast %65 : f32 to vector<8x128xf32>
    %317 = arith.mulf %316, %202 : vector<8x128xf32>
    %318 = vector.broadcast %67 : f32 to vector<8x128xf32>
    %319 = arith.mulf %318, %205 : vector<8x128xf32>
    %320 = arith.addf %317, %319 : vector<8x128xf32>
    %321 = vector.broadcast %69 : f32 to vector<8x128xf32>
    %322 = arith.mulf %321, %208 : vector<8x128xf32>
    %323 = arith.addf %320, %322 : vector<8x128xf32>
    %324 = vector.broadcast %71 : f32 to vector<8x128xf32>
    %325 = arith.mulf %324, %211 : vector<8x128xf32>
    %326 = arith.addf %323, %325 : vector<8x128xf32>
    %327 = vector.broadcast %73 : f32 to vector<8x128xf32>
    %328 = arith.mulf %327, %214 : vector<8x128xf32>
    %329 = arith.addf %326, %328 : vector<8x128xf32>
    %330 = vector.broadcast %75 : f32 to vector<8x128xf32>
    %331 = arith.mulf %330, %217 : vector<8x128xf32>
    %332 = arith.addf %329, %331 : vector<8x128xf32>
    %333 = vector.broadcast %77 : f32 to vector<8x128xf32>
    %334 = arith.mulf %333, %220 : vector<8x128xf32>
    %335 = arith.addf %332, %334 : vector<8x128xf32>
    %336 = vector.broadcast %79 : f32 to vector<8x128xf32>
    %337 = arith.mulf %336, %223 : vector<8x128xf32>
    %338 = arith.addf %335, %337 : vector<8x128xf32>
    %339 = vector.broadcast %81 : f32 to vector<8x128xf32>
    %340 = arith.mulf %339, %202 : vector<8x128xf32>
    %341 = vector.broadcast %83 : f32 to vector<8x128xf32>
    %342 = arith.mulf %341, %205 : vector<8x128xf32>
    %343 = arith.addf %340, %342 : vector<8x128xf32>
    %344 = vector.broadcast %85 : f32 to vector<8x128xf32>
    %345 = arith.mulf %344, %208 : vector<8x128xf32>
    %346 = arith.addf %343, %345 : vector<8x128xf32>
    %347 = vector.broadcast %87 : f32 to vector<8x128xf32>
    %348 = arith.mulf %347, %211 : vector<8x128xf32>
    %349 = arith.addf %346, %348 : vector<8x128xf32>
    %350 = vector.broadcast %89 : f32 to vector<8x128xf32>
    %351 = arith.mulf %350, %214 : vector<8x128xf32>
    %352 = arith.addf %349, %351 : vector<8x128xf32>
    %353 = vector.broadcast %91 : f32 to vector<8x128xf32>
    %354 = arith.mulf %353, %217 : vector<8x128xf32>
    %355 = arith.addf %352, %354 : vector<8x128xf32>
    %356 = vector.broadcast %93 : f32 to vector<8x128xf32>
    %357 = arith.mulf %356, %220 : vector<8x128xf32>
    %358 = arith.addf %355, %357 : vector<8x128xf32>
    %359 = vector.broadcast %95 : f32 to vector<8x128xf32>
    %360 = arith.mulf %359, %223 : vector<8x128xf32>
    %361 = arith.addf %358, %360 : vector<8x128xf32>
    %362 = vector.broadcast %97 : f32 to vector<8x128xf32>
    %363 = arith.mulf %362, %202 : vector<8x128xf32>
    %364 = vector.broadcast %99 : f32 to vector<8x128xf32>
    %365 = arith.mulf %364, %205 : vector<8x128xf32>
    %366 = arith.addf %363, %365 : vector<8x128xf32>
    %367 = vector.broadcast %101 : f32 to vector<8x128xf32>
    %368 = arith.mulf %367, %208 : vector<8x128xf32>
    %369 = arith.addf %366, %368 : vector<8x128xf32>
    %370 = vector.broadcast %103 : f32 to vector<8x128xf32>
    %371 = arith.mulf %370, %211 : vector<8x128xf32>
    %372 = arith.addf %369, %371 : vector<8x128xf32>
    %373 = vector.broadcast %105 : f32 to vector<8x128xf32>
    %374 = arith.mulf %373, %214 : vector<8x128xf32>
    %375 = arith.addf %372, %374 : vector<8x128xf32>
    %376 = vector.broadcast %107 : f32 to vector<8x128xf32>
    %377 = arith.mulf %376, %217 : vector<8x128xf32>
    %378 = arith.addf %375, %377 : vector<8x128xf32>
    %379 = vector.broadcast %109 : f32 to vector<8x128xf32>
    %380 = arith.mulf %379, %220 : vector<8x128xf32>
    %381 = arith.addf %378, %380 : vector<8x128xf32>
    %382 = vector.broadcast %111 : f32 to vector<8x128xf32>
    %383 = arith.mulf %382, %223 : vector<8x128xf32>
    %384 = arith.addf %381, %383 : vector<8x128xf32>
    %385 = vector.broadcast %113 : f32 to vector<8x128xf32>
    %386 = arith.mulf %385, %202 : vector<8x128xf32>
    %387 = vector.broadcast %115 : f32 to vector<8x128xf32>
    %388 = arith.mulf %387, %205 : vector<8x128xf32>
    %389 = arith.addf %386, %388 : vector<8x128xf32>
    %390 = vector.broadcast %117 : f32 to vector<8x128xf32>
    %391 = arith.mulf %390, %208 : vector<8x128xf32>
    %392 = arith.addf %389, %391 : vector<8x128xf32>
    %393 = vector.broadcast %119 : f32 to vector<8x128xf32>
    %394 = arith.mulf %393, %211 : vector<8x128xf32>
    %395 = arith.addf %392, %394 : vector<8x128xf32>
    %396 = vector.broadcast %121 : f32 to vector<8x128xf32>
    %397 = arith.mulf %396, %214 : vector<8x128xf32>
    %398 = arith.addf %395, %397 : vector<8x128xf32>
    %399 = vector.broadcast %123 : f32 to vector<8x128xf32>
    %400 = arith.mulf %399, %217 : vector<8x128xf32>
    %401 = arith.addf %398, %400 : vector<8x128xf32>
    %402 = vector.broadcast %125 : f32 to vector<8x128xf32>
    %403 = arith.mulf %402, %220 : vector<8x128xf32>
    %404 = arith.addf %401, %403 : vector<8x128xf32>
    %405 = vector.broadcast %127 : f32 to vector<8x128xf32>
    %406 = arith.mulf %405, %223 : vector<8x128xf32>
    %407 = arith.addf %404, %406 : vector<8x128xf32>
    %408 = vector.broadcast %129 : f32 to vector<8x128xf32>
    %409 = arith.mulf %408, %202 : vector<8x128xf32>
    %410 = vector.broadcast %131 : f32 to vector<8x128xf32>
    %411 = arith.mulf %410, %205 : vector<8x128xf32>
    %412 = arith.addf %409, %411 : vector<8x128xf32>
    %413 = vector.broadcast %133 : f32 to vector<8x128xf32>
    %414 = arith.mulf %413, %208 : vector<8x128xf32>
    %415 = arith.addf %412, %414 : vector<8x128xf32>
    %416 = vector.broadcast %135 : f32 to vector<8x128xf32>
    %417 = arith.mulf %416, %211 : vector<8x128xf32>
    %418 = arith.addf %415, %417 : vector<8x128xf32>
    %419 = vector.broadcast %137 : f32 to vector<8x128xf32>
    %420 = arith.mulf %419, %214 : vector<8x128xf32>
    %421 = arith.addf %418, %420 : vector<8x128xf32>
    %422 = vector.broadcast %139 : f32 to vector<8x128xf32>
    %423 = arith.mulf %422, %217 : vector<8x128xf32>
    %424 = arith.addf %421, %423 : vector<8x128xf32>
    %425 = vector.broadcast %141 : f32 to vector<8x128xf32>
    %426 = arith.mulf %425, %220 : vector<8x128xf32>
    %427 = arith.addf %424, %426 : vector<8x128xf32>
    %428 = vector.broadcast %143 : f32 to vector<8x128xf32>
    %429 = arith.mulf %428, %223 : vector<8x128xf32>
    %430 = arith.addf %427, %429 : vector<8x128xf32>
    %431 = vector.broadcast %145 : f32 to vector<8x128xf32>
    %432 = arith.mulf %431, %202 : vector<8x128xf32>
    %433 = vector.broadcast %147 : f32 to vector<8x128xf32>
    %434 = arith.mulf %433, %205 : vector<8x128xf32>
    %435 = arith.addf %432, %434 : vector<8x128xf32>
    %436 = vector.broadcast %149 : f32 to vector<8x128xf32>
    %437 = arith.mulf %436, %208 : vector<8x128xf32>
    %438 = arith.addf %435, %437 : vector<8x128xf32>
    %439 = vector.broadcast %151 : f32 to vector<8x128xf32>
    %440 = arith.mulf %439, %211 : vector<8x128xf32>
    %441 = arith.addf %438, %440 : vector<8x128xf32>
    %442 = vector.broadcast %153 : f32 to vector<8x128xf32>
    %443 = arith.mulf %442, %214 : vector<8x128xf32>
    %444 = arith.addf %441, %443 : vector<8x128xf32>
    %445 = vector.broadcast %155 : f32 to vector<8x128xf32>
    %446 = arith.mulf %445, %217 : vector<8x128xf32>
    %447 = arith.addf %444, %446 : vector<8x128xf32>
    %448 = vector.broadcast %157 : f32 to vector<8x128xf32>
    %449 = arith.mulf %448, %220 : vector<8x128xf32>
    %450 = arith.addf %447, %449 : vector<8x128xf32>
    %451 = vector.broadcast %159 : f32 to vector<8x128xf32>
    %452 = arith.mulf %451, %223 : vector<8x128xf32>
    %453 = arith.addf %450, %452 : vector<8x128xf32>
    %454 = vector.broadcast %161 : f32 to vector<8x128xf32>
    %455 = arith.mulf %454, %202 : vector<8x128xf32>
    %456 = vector.broadcast %163 : f32 to vector<8x128xf32>
    %457 = arith.mulf %456, %205 : vector<8x128xf32>
    %458 = arith.addf %455, %457 : vector<8x128xf32>
    %459 = vector.broadcast %165 : f32 to vector<8x128xf32>
    %460 = arith.mulf %459, %208 : vector<8x128xf32>
    %461 = arith.addf %458, %460 : vector<8x128xf32>
    %462 = vector.broadcast %167 : f32 to vector<8x128xf32>
    %463 = arith.mulf %462, %211 : vector<8x128xf32>
    %464 = arith.addf %461, %463 : vector<8x128xf32>
    %465 = vector.broadcast %169 : f32 to vector<8x128xf32>
    %466 = arith.mulf %465, %214 : vector<8x128xf32>
    %467 = arith.addf %464, %466 : vector<8x128xf32>
    %468 = vector.broadcast %171 : f32 to vector<8x128xf32>
    %469 = arith.mulf %468, %217 : vector<8x128xf32>
    %470 = arith.addf %467, %469 : vector<8x128xf32>
    %471 = vector.broadcast %173 : f32 to vector<8x128xf32>
    %472 = arith.mulf %471, %220 : vector<8x128xf32>
    %473 = arith.addf %470, %472 : vector<8x128xf32>
    %474 = vector.broadcast %175 : f32 to vector<8x128xf32>
    %475 = arith.mulf %474, %223 : vector<8x128xf32>
    %476 = arith.addf %473, %475 : vector<8x128xf32>
    %477 = vector.broadcast %177 : f32 to vector<8x128xf32>
    %478 = arith.mulf %477, %202 : vector<8x128xf32>
    %479 = vector.broadcast %179 : f32 to vector<8x128xf32>
    %480 = arith.mulf %479, %205 : vector<8x128xf32>
    %481 = arith.addf %478, %480 : vector<8x128xf32>
    %482 = vector.broadcast %181 : f32 to vector<8x128xf32>
    %483 = arith.mulf %482, %208 : vector<8x128xf32>
    %484 = arith.addf %481, %483 : vector<8x128xf32>
    %485 = vector.broadcast %183 : f32 to vector<8x128xf32>
    %486 = arith.mulf %485, %211 : vector<8x128xf32>
    %487 = arith.addf %484, %486 : vector<8x128xf32>
    %488 = vector.broadcast %185 : f32 to vector<8x128xf32>
    %489 = arith.mulf %488, %214 : vector<8x128xf32>
    %490 = arith.addf %487, %489 : vector<8x128xf32>
    %491 = vector.broadcast %187 : f32 to vector<8x128xf32>
    %492 = arith.mulf %491, %217 : vector<8x128xf32>
    %493 = arith.addf %490, %492 : vector<8x128xf32>
    %494 = vector.broadcast %189 : f32 to vector<8x128xf32>
    %495 = arith.mulf %494, %220 : vector<8x128xf32>
    %496 = arith.addf %493, %495 : vector<8x128xf32>
    %497 = vector.broadcast %191 : f32 to vector<8x128xf32>
    %498 = arith.mulf %497, %223 : vector<8x128xf32>
    %499 = arith.addf %496, %498 : vector<8x128xf32>
    %c0_19 = arith.constant 0 : index
    %500 = arith.index_cast %199 : i32 to index
    %c0_20 = arith.constant 0 : index
    %501 = vector.load %arg5[%c0_19, %500, %c0_20] : memref<3x8x128xf32, #tpu.memory_space<vmem>>, vector<1x8x128xf32>
    %502 = vector.shape_cast %501 : vector<1x8x128xf32> to vector<8x128xf32>
    %c1_21 = arith.constant 1 : index
    %503 = arith.index_cast %199 : i32 to index
    %c0_22 = arith.constant 0 : index
    %504 = vector.load %arg5[%c1_21, %503, %c0_22] : memref<3x8x128xf32, #tpu.memory_space<vmem>>, vector<1x8x128xf32>
    %505 = vector.shape_cast %504 : vector<1x8x128xf32> to vector<8x128xf32>
    %c2_23 = arith.constant 2 : index
    %506 = arith.index_cast %199 : i32 to index
    %c0_24 = arith.constant 0 : index
    %507 = vector.load %arg5[%c2_23, %506, %c0_24] : memref<3x8x128xf32, #tpu.memory_space<vmem>>, vector<1x8x128xf32>
    %508 = vector.shape_cast %507 : vector<1x8x128xf32> to vector<8x128xf32>
    %509 = arith.mulf %246, %502 : vector<8x128xf32>
    %510 = arith.mulf %269, %505 : vector<8x128xf32>
    %511 = arith.addf %509, %510 : vector<8x128xf32>
    %512 = arith.mulf %292, %508 : vector<8x128xf32>
    %513 = arith.addf %511, %512 : vector<8x128xf32>
    %514 = arith.addf %513, %315 : vector<8x128xf32>
    %515 = vector.broadcast %193 : f32 to vector<8x128xf32>
    %516 = arith.addf %514, %515 : vector<8x128xf32>
    %517 = arith.mulf %338, %502 : vector<8x128xf32>
    %518 = arith.mulf %361, %505 : vector<8x128xf32>
    %519 = arith.addf %517, %518 : vector<8x128xf32>
    %520 = arith.mulf %384, %508 : vector<8x128xf32>
    %521 = arith.addf %519, %520 : vector<8x128xf32>
    %522 = arith.addf %521, %407 : vector<8x128xf32>
    %523 = vector.broadcast %195 : f32 to vector<8x128xf32>
    %524 = arith.addf %522, %523 : vector<8x128xf32>
    %525 = arith.mulf %430, %502 : vector<8x128xf32>
    %526 = arith.mulf %453, %505 : vector<8x128xf32>
    %527 = arith.addf %525, %526 : vector<8x128xf32>
    %528 = arith.mulf %476, %508 : vector<8x128xf32>
    %529 = arith.addf %527, %528 : vector<8x128xf32>
    %530 = arith.addf %529, %499 : vector<8x128xf32>
    %531 = vector.broadcast %197 : f32 to vector<8x128xf32>
    %532 = arith.addf %530, %531 : vector<8x128xf32>
    %c0_25 = arith.constant 0 : index
    %533 = arith.index_cast %199 : i32 to index
    %c0_26 = arith.constant 0 : index
    %534 = vector.load %arg6[%c0_25, %533, %c0_26] : memref<4x8x128xf32, #tpu.memory_space<vmem>>, vector<1x8x128xf32>
    %535 = vector.shape_cast %534 : vector<1x8x128xf32> to vector<8x128xf32>
    %c1_27 = arith.constant 1 : index
    %536 = arith.index_cast %199 : i32 to index
    %c0_28 = arith.constant 0 : index
    %537 = vector.load %arg6[%c1_27, %536, %c0_28] : memref<4x8x128xf32, #tpu.memory_space<vmem>>, vector<1x8x128xf32>
    %538 = vector.shape_cast %537 : vector<1x8x128xf32> to vector<8x128xf32>
    %c2_29 = arith.constant 2 : index
    %539 = arith.index_cast %199 : i32 to index
    %c0_30 = arith.constant 0 : index
    %540 = vector.load %arg6[%c2_29, %539, %c0_30] : memref<4x8x128xf32, #tpu.memory_space<vmem>>, vector<1x8x128xf32>
    %541 = vector.shape_cast %540 : vector<1x8x128xf32> to vector<8x128xf32>
    %c3_31 = arith.constant 3 : index
    %542 = arith.index_cast %199 : i32 to index
    %c0_32 = arith.constant 0 : index
    %543 = vector.load %arg6[%c3_31, %542, %c0_32] : memref<4x8x128xf32, #tpu.memory_space<vmem>>, vector<1x8x128xf32>
    %544 = vector.shape_cast %543 : vector<1x8x128xf32> to vector<8x128xf32>
    %545 = arith.mulf %535, %535 : vector<8x128xf32>
    %546 = arith.mulf %538, %538 : vector<8x128xf32>
    %547 = arith.addf %545, %546 : vector<8x128xf32>
    %548 = arith.mulf %541, %541 : vector<8x128xf32>
    %549 = arith.addf %547, %548 : vector<8x128xf32>
    %550 = arith.mulf %544, %544 : vector<8x128xf32>
    %551 = arith.addf %549, %550 : vector<8x128xf32>
    %552 = tpu.reciprocal %551 {approx = true} : vector<8x128xf32> -> vector<8x128xf32>
    %cst = arith.constant 2.000000e+00 : f32
    %553 = vector.broadcast %cst : f32 to vector<8x128xf32>
    %554 = arith.mulf %553, %552 : vector<8x128xf32>
    %555 = arith.mulf %541, %541 : vector<8x128xf32>
    %556 = arith.mulf %544, %544 : vector<8x128xf32>
    %557 = arith.addf %555, %556 : vector<8x128xf32>
    %558 = arith.mulf %554, %557 : vector<8x128xf32>
    %cst_33 = arith.constant 1.000000e+00 : f32
    %559 = vector.broadcast %cst_33 : f32 to vector<8x128xf32>
    %560 = arith.subf %559, %558 : vector<8x128xf32>
    %561 = arith.mulf %538, %541 : vector<8x128xf32>
    %562 = arith.mulf %544, %535 : vector<8x128xf32>
    %563 = arith.subf %561, %562 : vector<8x128xf32>
    %564 = arith.mulf %554, %563 : vector<8x128xf32>
    %565 = arith.mulf %538, %544 : vector<8x128xf32>
    %566 = arith.mulf %541, %535 : vector<8x128xf32>
    %567 = arith.addf %565, %566 : vector<8x128xf32>
    %568 = arith.mulf %554, %567 : vector<8x128xf32>
    %569 = arith.mulf %538, %541 : vector<8x128xf32>
    %570 = arith.mulf %544, %535 : vector<8x128xf32>
    %571 = arith.addf %569, %570 : vector<8x128xf32>
    %572 = arith.mulf %554, %571 : vector<8x128xf32>
    %573 = arith.mulf %538, %538 : vector<8x128xf32>
    %574 = arith.mulf %544, %544 : vector<8x128xf32>
    %575 = arith.addf %573, %574 : vector<8x128xf32>
    %576 = arith.mulf %554, %575 : vector<8x128xf32>
    %cst_34 = arith.constant 1.000000e+00 : f32
    %577 = vector.broadcast %cst_34 : f32 to vector<8x128xf32>
    %578 = arith.subf %577, %576 : vector<8x128xf32>
    %579 = arith.mulf %541, %544 : vector<8x128xf32>
    %580 = arith.mulf %538, %535 : vector<8x128xf32>
    %581 = arith.subf %579, %580 : vector<8x128xf32>
    %582 = arith.mulf %554, %581 : vector<8x128xf32>
    %583 = arith.mulf %538, %544 : vector<8x128xf32>
    %584 = arith.mulf %541, %535 : vector<8x128xf32>
    %585 = arith.subf %583, %584 : vector<8x128xf32>
    %586 = arith.mulf %554, %585 : vector<8x128xf32>
    %587 = arith.mulf %541, %544 : vector<8x128xf32>
    %588 = arith.mulf %538, %535 : vector<8x128xf32>
    %589 = arith.addf %587, %588 : vector<8x128xf32>
    %590 = arith.mulf %554, %589 : vector<8x128xf32>
    %591 = arith.mulf %538, %538 : vector<8x128xf32>
    %592 = arith.mulf %541, %541 : vector<8x128xf32>
    %593 = arith.addf %591, %592 : vector<8x128xf32>
    %594 = arith.mulf %554, %593 : vector<8x128xf32>
    %cst_35 = arith.constant 1.000000e+00 : f32
    %595 = vector.broadcast %cst_35 : f32 to vector<8x128xf32>
    %596 = arith.subf %595, %594 : vector<8x128xf32>
    %597 = arith.mulf %246, %560 : vector<8x128xf32>
    %598 = arith.mulf %269, %572 : vector<8x128xf32>
    %599 = arith.addf %597, %598 : vector<8x128xf32>
    %600 = arith.mulf %292, %586 : vector<8x128xf32>
    %601 = arith.addf %599, %600 : vector<8x128xf32>
    %602 = arith.mulf %246, %564 : vector<8x128xf32>
    %603 = arith.mulf %269, %578 : vector<8x128xf32>
    %604 = arith.addf %602, %603 : vector<8x128xf32>
    %605 = arith.mulf %292, %590 : vector<8x128xf32>
    %606 = arith.addf %604, %605 : vector<8x128xf32>
    %607 = arith.mulf %246, %568 : vector<8x128xf32>
    %608 = arith.mulf %269, %582 : vector<8x128xf32>
    %609 = arith.addf %607, %608 : vector<8x128xf32>
    %610 = arith.mulf %292, %596 : vector<8x128xf32>
    %611 = arith.addf %609, %610 : vector<8x128xf32>
    %612 = arith.mulf %338, %560 : vector<8x128xf32>
    %613 = arith.mulf %361, %572 : vector<8x128xf32>
    %614 = arith.addf %612, %613 : vector<8x128xf32>
    %615 = arith.mulf %384, %586 : vector<8x128xf32>
    %616 = arith.addf %614, %615 : vector<8x128xf32>
    %617 = arith.mulf %338, %564 : vector<8x128xf32>
    %618 = arith.mulf %361, %578 : vector<8x128xf32>
    %619 = arith.addf %617, %618 : vector<8x128xf32>
    %620 = arith.mulf %384, %590 : vector<8x128xf32>
    %621 = arith.addf %619, %620 : vector<8x128xf32>
    %622 = arith.mulf %338, %568 : vector<8x128xf32>
    %623 = arith.mulf %361, %582 : vector<8x128xf32>
    %624 = arith.addf %622, %623 : vector<8x128xf32>
    %625 = arith.mulf %384, %596 : vector<8x128xf32>
    %626 = arith.addf %624, %625 : vector<8x128xf32>
    %627 = arith.mulf %430, %560 : vector<8x128xf32>
    %628 = arith.mulf %453, %572 : vector<8x128xf32>
    %629 = arith.addf %627, %628 : vector<8x128xf32>
    %630 = arith.mulf %476, %586 : vector<8x128xf32>
    %631 = arith.addf %629, %630 : vector<8x128xf32>
    %632 = arith.mulf %430, %564 : vector<8x128xf32>
    %633 = arith.mulf %453, %578 : vector<8x128xf32>
    %634 = arith.addf %632, %633 : vector<8x128xf32>
    %635 = arith.mulf %476, %590 : vector<8x128xf32>
    %636 = arith.addf %634, %635 : vector<8x128xf32>
    %637 = arith.mulf %430, %568 : vector<8x128xf32>
    %638 = arith.mulf %453, %582 : vector<8x128xf32>
    %639 = arith.addf %637, %638 : vector<8x128xf32>
    %640 = arith.mulf %476, %596 : vector<8x128xf32>
    %641 = arith.addf %639, %640 : vector<8x128xf32>
    %cst_36 = arith.constant 1.000000e+00 : f32
    %642 = vector.broadcast %cst_36 : f32 to vector<8x128xf32>
    %643 = arith.addf %642, %601 : vector<8x128xf32>
    %644 = arith.addf %643, %621 : vector<8x128xf32>
    %645 = arith.addf %644, %641 : vector<8x128xf32>
    %cst_37 = arith.constant 0.000000e+00 : f32
    %646 = vector.broadcast %cst_37 : f32 to vector<8x128xf32>
    %647 = arith.maximumf %645, %646 : vector<8x128xf32>
    %648 = math.sqrt %647 : vector<8x128xf32>
    %cst_38 = arith.constant 1.000000e+00 : f32
    %649 = vector.broadcast %cst_38 : f32 to vector<8x128xf32>
    %650 = arith.addf %649, %601 : vector<8x128xf32>
    %651 = arith.subf %650, %621 : vector<8x128xf32>
    %652 = arith.subf %651, %641 : vector<8x128xf32>
    %cst_39 = arith.constant 0.000000e+00 : f32
    %653 = vector.broadcast %cst_39 : f32 to vector<8x128xf32>
    %654 = arith.maximumf %652, %653 : vector<8x128xf32>
    %655 = math.sqrt %654 : vector<8x128xf32>
    %cst_40 = arith.constant 1.000000e+00 : f32
    %656 = vector.broadcast %cst_40 : f32 to vector<8x128xf32>
    %657 = arith.subf %656, %601 : vector<8x128xf32>
    %658 = arith.addf %657, %621 : vector<8x128xf32>
    %659 = arith.subf %658, %641 : vector<8x128xf32>
    %cst_41 = arith.constant 0.000000e+00 : f32
    %660 = vector.broadcast %cst_41 : f32 to vector<8x128xf32>
    %661 = arith.maximumf %659, %660 : vector<8x128xf32>
    %662 = math.sqrt %661 : vector<8x128xf32>
    %cst_42 = arith.constant 1.000000e+00 : f32
    %663 = vector.broadcast %cst_42 : f32 to vector<8x128xf32>
    %664 = arith.subf %663, %601 : vector<8x128xf32>
    %665 = arith.subf %664, %621 : vector<8x128xf32>
    %666 = arith.addf %665, %641 : vector<8x128xf32>
    %cst_43 = arith.constant 0.000000e+00 : f32
    %667 = vector.broadcast %cst_43 : f32 to vector<8x128xf32>
    %668 = arith.maximumf %666, %667 : vector<8x128xf32>
    %669 = math.sqrt %668 : vector<8x128xf32>
    %cst_44 = arith.constant 1.000000e-01 : f32
    %670 = vector.broadcast %cst_44 : f32 to vector<8x128xf32>
    %671 = arith.maximumf %648, %670 : vector<8x128xf32>
    %672 = tpu.reciprocal %671 {approx = true} : vector<8x128xf32> -> vector<8x128xf32>
    %cst_45 = arith.constant 5.000000e-01 : f32
    %673 = vector.broadcast %cst_45 : f32 to vector<8x128xf32>
    %674 = arith.mulf %673, %672 : vector<8x128xf32>
    %cst_46 = arith.constant 1.000000e-01 : f32
    %675 = vector.broadcast %cst_46 : f32 to vector<8x128xf32>
    %676 = arith.maximumf %655, %675 : vector<8x128xf32>
    %677 = tpu.reciprocal %676 {approx = true} : vector<8x128xf32> -> vector<8x128xf32>
    %cst_47 = arith.constant 5.000000e-01 : f32
    %678 = vector.broadcast %cst_47 : f32 to vector<8x128xf32>
    %679 = arith.mulf %678, %677 : vector<8x128xf32>
    %cst_48 = arith.constant 1.000000e-01 : f32
    %680 = vector.broadcast %cst_48 : f32 to vector<8x128xf32>
    %681 = arith.maximumf %662, %680 : vector<8x128xf32>
    %682 = tpu.reciprocal %681 {approx = true} : vector<8x128xf32> -> vector<8x128xf32>
    %cst_49 = arith.constant 5.000000e-01 : f32
    %683 = vector.broadcast %cst_49 : f32 to vector<8x128xf32>
    %684 = arith.mulf %683, %682 : vector<8x128xf32>
    %cst_50 = arith.constant 1.000000e-01 : f32
    %685 = vector.broadcast %cst_50 : f32 to vector<8x128xf32>
    %686 = arith.maximumf %669, %685 : vector<8x128xf32>
    %687 = tpu.reciprocal %686 {approx = true} : vector<8x128xf32> -> vector<8x128xf32>
    %cst_51 = arith.constant 5.000000e-01 : f32
    %688 = vector.broadcast %cst_51 : f32 to vector<8x128xf32>
    %689 = arith.mulf %688, %687 : vector<8x128xf32>
    %690 = arith.cmpf oge, %648, %655 : vector<8x128xf32>
    %691 = arith.cmpf oge, %648, %662 : vector<8x128xf32>
    %692 = arith.andi %690, %691 : vector<8x128xi1>
    %693 = arith.cmpf oge, %648, %669 : vector<8x128xf32>
    %694 = arith.andi %692, %693 : vector<8x128xi1>
    %cst_52 = arith.constant dense<true> : vector<8x128xi1>
    %695 = arith.xori %694, %cst_52 : vector<8x128xi1>
    %696 = arith.cmpf oge, %655, %662 : vector<8x128xf32>
    %697 = arith.andi %695, %696 : vector<8x128xi1>
    %698 = arith.cmpf oge, %655, %669 : vector<8x128xf32>
    %699 = arith.andi %697, %698 : vector<8x128xi1>
    %cst_53 = arith.constant dense<true> : vector<8x128xi1>
    %700 = arith.xori %694, %cst_53 : vector<8x128xi1>
    %cst_54 = arith.constant dense<true> : vector<8x128xi1>
    %701 = arith.xori %699, %cst_54 : vector<8x128xi1>
    %702 = arith.andi %700, %701 : vector<8x128xi1>
    %703 = arith.cmpf oge, %662, %669 : vector<8x128xf32>
    %704 = arith.andi %702, %703 : vector<8x128xi1>
    %705 = arith.mulf %648, %648 : vector<8x128xf32>
    %706 = arith.mulf %705, %674 : vector<8x128xf32>
    %707 = arith.subf %636, %626 : vector<8x128xf32>
    %708 = arith.mulf %707, %679 : vector<8x128xf32>
    %709 = arith.subf %611, %631 : vector<8x128xf32>
    %710 = arith.mulf %709, %684 : vector<8x128xf32>
    %711 = arith.subf %616, %606 : vector<8x128xf32>
    %712 = arith.mulf %711, %689 : vector<8x128xf32>
    %713 = arith.select %704, %710, %712 : vector<8x128xi1>, vector<8x128xf32>
    %714 = arith.select %699, %708, %713 : vector<8x128xi1>, vector<8x128xf32>
    %715 = arith.select %694, %706, %714 : vector<8x128xi1>, vector<8x128xf32>
    %716 = arith.subf %636, %626 : vector<8x128xf32>
    %717 = arith.mulf %716, %674 : vector<8x128xf32>
    %718 = arith.mulf %655, %655 : vector<8x128xf32>
    %719 = arith.mulf %718, %679 : vector<8x128xf32>
    %720 = arith.addf %616, %606 : vector<8x128xf32>
    %721 = arith.mulf %720, %684 : vector<8x128xf32>
    %722 = arith.addf %611, %631 : vector<8x128xf32>
    %723 = arith.mulf %722, %689 : vector<8x128xf32>
    %724 = arith.select %704, %721, %723 : vector<8x128xi1>, vector<8x128xf32>
    %725 = arith.select %699, %719, %724 : vector<8x128xi1>, vector<8x128xf32>
    %726 = arith.select %694, %717, %725 : vector<8x128xi1>, vector<8x128xf32>
    %727 = arith.subf %611, %631 : vector<8x128xf32>
    %728 = arith.mulf %727, %674 : vector<8x128xf32>
    %729 = arith.addf %616, %606 : vector<8x128xf32>
    %730 = arith.mulf %729, %679 : vector<8x128xf32>
    %731 = arith.mulf %662, %662 : vector<8x128xf32>
    %732 = arith.mulf %731, %684 : vector<8x128xf32>
    %733 = arith.addf %626, %636 : vector<8x128xf32>
    %734 = arith.mulf %733, %689 : vector<8x128xf32>
    %735 = arith.select %704, %732, %734 : vector<8x128xi1>, vector<8x128xf32>
    %736 = arith.select %699, %730, %735 : vector<8x128xi1>, vector<8x128xf32>
    %737 = arith.select %694, %728, %736 : vector<8x128xi1>, vector<8x128xf32>
    %738 = arith.subf %616, %606 : vector<8x128xf32>
    %739 = arith.mulf %738, %674 : vector<8x128xf32>
    %740 = arith.addf %611, %631 : vector<8x128xf32>
    %741 = arith.mulf %740, %679 : vector<8x128xf32>
    %742 = arith.addf %626, %636 : vector<8x128xf32>
    %743 = arith.mulf %742, %684 : vector<8x128xf32>
    %744 = arith.mulf %669, %669 : vector<8x128xf32>
    %745 = arith.mulf %744, %689 : vector<8x128xf32>
    %746 = arith.select %704, %743, %745 : vector<8x128xi1>, vector<8x128xf32>
    %747 = arith.select %699, %741, %746 : vector<8x128xi1>, vector<8x128xf32>
    %748 = arith.select %694, %739, %747 : vector<8x128xi1>, vector<8x128xf32>
    %c0_55 = arith.constant 0 : index
    %c0_56 = arith.constant 0 : index
    %749 = arith.index_cast %199 : i32 to index
    %c0_57 = arith.constant 0 : index
    %750 = vector.load %arg7[%c0_55, %c0_56, %749, %c0_57] : memref<1x7x8x128xf32, #tpu.memory_space<vmem>>, vector<1x1x8x128xf32>
    %751 = vector.shape_cast %750 : vector<1x1x8x128xf32> to vector<8x128xf32>
    %752 = vector.shape_cast %516 : vector<8x128xf32> to vector<1x1x8x128xf32>
    tpu.vector_store %arg7[%c0_55, %c0_56, %749, %c0_57], %752 {strides = array<i32>} : memref<1x7x8x128xf32, #tpu.memory_space<vmem>>, vector<1x1x8x128xf32>,
    %c0_58 = arith.constant 0 : index
    %c1_59 = arith.constant 1 : index
    %753 = arith.index_cast %199 : i32 to index
    %c0_60 = arith.constant 0 : index
    %754 = vector.load %arg7[%c0_58, %c1_59, %753, %c0_60] : memref<1x7x8x128xf32, #tpu.memory_space<vmem>>, vector<1x1x8x128xf32>
    %755 = vector.shape_cast %754 : vector<1x1x8x128xf32> to vector<8x128xf32>
    %756 = vector.shape_cast %524 : vector<8x128xf32> to vector<1x1x8x128xf32>
    tpu.vector_store %arg7[%c0_58, %c1_59, %753, %c0_60], %756 {strides = array<i32>} : memref<1x7x8x128xf32, #tpu.memory_space<vmem>>, vector<1x1x8x128xf32>,
    %c0_61 = arith.constant 0 : index
    %c2_62 = arith.constant 2 : index
    %757 = arith.index_cast %199 : i32 to index
    %c0_63 = arith.constant 0 : index
    %758 = vector.load %arg7[%c0_61, %c2_62, %757, %c0_63] : memref<1x7x8x128xf32, #tpu.memory_space<vmem>>, vector<1x1x8x128xf32>
    %759 = vector.shape_cast %758 : vector<1x1x8x128xf32> to vector<8x128xf32>
    %760 = vector.shape_cast %532 : vector<8x128xf32> to vector<1x1x8x128xf32>
    tpu.vector_store %arg7[%c0_61, %c2_62, %757, %c0_63], %760 {strides = array<i32>} : memref<1x7x8x128xf32, #tpu.memory_space<vmem>>, vector<1x1x8x128xf32>,
    %c0_64 = arith.constant 0 : index
    %c3_65 = arith.constant 3 : index
    %761 = arith.index_cast %199 : i32 to index
    %c0_66 = arith.constant 0 : index
    %762 = vector.load %arg7[%c0_64, %c3_65, %761, %c0_66] : memref<1x7x8x128xf32, #tpu.memory_space<vmem>>, vector<1x1x8x128xf32>
    %763 = vector.shape_cast %762 : vector<1x1x8x128xf32> to vector<8x128xf32>
    %764 = vector.shape_cast %715 : vector<8x128xf32> to vector<1x1x8x128xf32>
    tpu.vector_store %arg7[%c0_64, %c3_65, %761, %c0_66], %764 {strides = array<i32>} : memref<1x7x8x128xf32, #tpu.memory_space<vmem>>, vector<1x1x8x128xf32>,
    %c0_67 = arith.constant 0 : index
    %c4_68 = arith.constant 4 : index
    %765 = arith.index_cast %199 : i32 to index
    %c0_69 = arith.constant 0 : index
    %766 = vector.load %arg7[%c0_67, %c4_68, %765, %c0_69] : memref<1x7x8x128xf32, #tpu.memory_space<vmem>>, vector<1x1x8x128xf32>
    %767 = vector.shape_cast %766 : vector<1x1x8x128xf32> to vector<8x128xf32>
    %768 = vector.shape_cast %726 : vector<8x128xf32> to vector<1x1x8x128xf32>
    tpu.vector_store %arg7[%c0_67, %c4_68, %765, %c0_69], %768 {strides = array<i32>} : memref<1x7x8x128xf32, #tpu.memory_space<vmem>>, vector<1x1x8x128xf32>,
    %c0_70 = arith.constant 0 : index
    %c5_71 = arith.constant 5 : index
    %769 = arith.index_cast %199 : i32 to index
    %c0_72 = arith.constant 0 : index
    %770 = vector.load %arg7[%c0_70, %c5_71, %769, %c0_72] : memref<1x7x8x128xf32, #tpu.memory_space<vmem>>, vector<1x1x8x128xf32>
    %771 = vector.shape_cast %770 : vector<1x1x8x128xf32> to vector<8x128xf32>
    %772 = vector.shape_cast %737 : vector<8x128xf32> to vector<1x1x8x128xf32>
    tpu.vector_store %arg7[%c0_70, %c5_71, %769, %c0_72], %772 {strides = array<i32>} : memref<1x7x8x128xf32, #tpu.memory_space<vmem>>, vector<1x1x8x128xf32>,
    %c0_73 = arith.constant 0 : index
    %c6_74 = arith.constant 6 : index
    %773 = arith.index_cast %199 : i32 to index
    %c0_75 = arith.constant 0 : index
    %774 = vector.load %arg7[%c0_73, %c6_74, %773, %c0_75] : memref<1x7x8x128xf32, #tpu.memory_space<vmem>>, vector<1x1x8x128xf32>
    %775 = vector.shape_cast %774 : vector<1x1x8x128xf32> to vector<8x128xf32>
    %776 = vector.shape_cast %748 : vector<8x128xf32> to vector<1x1x8x128xf32>
    tpu.vector_store %arg7[%c0_73, %c6_74, %773, %c0_75], %776 {strides = array<i32>} : memref<1x7x8x128xf32, #tpu.memory_space<vmem>>, vector<1x1x8x128xf32>,
    %c1_i32 = arith.constant 1 : i32
    return
  }
  func.func @transform_0(%arg0: i32, %arg1: i32) -> (i32, i32) {
    %c0_i32 = arith.constant 0 : i32
    %c0_i32_0 = arith.constant 0 : i32
    %c0_i32_1 = arith.constant 0 : i32
    return %c0_i32, %c0_i32_0 : i32, i32
  }
  func.func @transform_1(%arg0: i32, %arg1: i32) -> (i32, i32) {
    %c0_i32 = arith.constant 0 : i32
    %c0_i32_0 = arith.constant 0 : i32
    %c0_i32_1 = arith.constant 0 : i32
    return %c0_i32, %c0_i32_0 : i32, i32
  }
  func.func @transform_2(%arg0: i32, %arg1: i32) -> (i32, i32, i32) {
    %c0_i32 = arith.constant 0 : i32
    %c0_i32_0 = arith.constant 0 : i32
    %c0_i32_1 = arith.constant 0 : i32
    return %c0_i32, %arg0, %c0_i32_0 : i32, i32, i32
  }
  func.func @transform_3(%arg0: i32, %arg1: i32) -> (i32, i32, i32) {
    %c0_i32 = arith.constant 0 : i32
    %c0_i32_0 = arith.constant 0 : i32
    %c0_i32_1 = arith.constant 0 : i32
    return %c0_i32, %arg0, %c0_i32_0 : i32, i32, i32
  }
  func.func @transform_4(%arg0: i32, %arg1: i32) -> (i32, i32, i32) {
    %c0_i32 = arith.constant 0 : i32
    %c0_i32_0 = arith.constant 0 : i32
    %c0_i32_1 = arith.constant 0 : i32
    return %c0_i32, %arg0, %c0_i32_0 : i32, i32, i32
  }
  func.func @transform_5(%arg0: i32, %arg1: i32) -> (i32, i32, i32, i32) {
    %c0_i32 = arith.constant 0 : i32
    %c0_i32_0 = arith.constant 0 : i32
    %c0_i32_1 = arith.constant 0 : i32
    return %arg1, %c0_i32, %arg0, %c0_i32_0 : i32, i32, i32, i32
  }
}

</mosaic_0001>

<bundles_post_ra>
// kernel: tpu_custom_call.1
= control target key start
LH: loop header
LB: loop body
LE: loop exit
PB: predicated region body
PF: predicated region fallthrough
CT: control target
= control target key end

     0   :  { %s2611_s0 = inlined_call_operand.hbm [shape: f32[2,96], index: 0, kind: input, shape index: {}]   ;;  %s2612_s1 = inlined_call_operand.hbm [shape: f32[2,3], index: 1, kind: input, shape index: {}]   ;;  %s2613_s2 = inlined_call_operand.hbm [shape: f32[8,8,128], index: 2, kind: input, shape index: {}]   ;;  %s2614_s3 = inlined_call_operand.hbm [shape: f32[3,8,128], index: 3, kind: input, shape index: {}]   ;;  %s2615_s4 = inlined_call_operand.hbm [shape: f32[4,8,128], index: 4, kind: input, shape index: {}]   ;;  %s2616_s5 = inlined_call_operand.hbm [shape: f32[2,7,8,128], index: 5, kind: output, shape index: {}]  }
   0x1   :  { %2622 = sst [smem:[#allocation22_spill]] %s2611_s0 }
   0x2   :  { %2623 = sst [smem:[#allocation23_spill]] %s2612_s1 }
   0x3   :  { %2624 = sst [smem:[#allocation24_spill]] %s2613_s2 }
   0x4   :  { %2625 = sst [smem:[#allocation25_spill]] %s2614_s3 }
   0x5   :  { %2626 = sst [smem:[#allocation26_spill]] %s2615_s4 }
   0x6   :  { %10 = vsyncpa [#allocation5], 0 }
   0x7   :  { %11 = vsyncpa [#allocation7], 0 }
   0x8   :  { %12 = vsyncpa [#allocation3], 0 }
   0x9   :  { %13 = vsyncpa [#allocation10], 0 }
   0xa   :  { %14 = vsyncpa [#allocation4], 0 }
   0xb   :  { %16 = vsyncpa [#allocation4 + $0x1], 0  ;;  %s1576_s18 = smov 0   ;;  %s1578_s19 = smov 0  }
   0xc   :  { %s1580_s20 = smov 0   ;;  %s1582_s21 = smov 0  }
   0xd   :  { %s1584_s22 = smov 0   ;;  %s1586_s23 = smov 0  }
   0xe LB: > { %2627 = sst [smem:[#allocation18_spill]] %s1521_s20  ;;  %s1186_s24 = sadd.s32 4294967295, %s1533_s23   ;;  %s1533_s23 = sphi %s1586_s23, %s22_s23   ;;  %s1529_s22 = sphi %s1584_s22, %s2657_s22   ;;  %s1525_s21 = sphi %s1582_s21, %s2656_s21   ;;  %s1521_s20 = sphi %s1580_s20, %s2655_s20   ;;  %s1517_s19 = sphi %s1578_s19, %s2659_s19   ;;  %s1513_s18 = sphi %s1576_s18, %s2658_s18  }
   0xf   : > { %2628 = sst [smem:[#allocation19_spill]] %s1529_s22  ;;  %s1187_s25 = sadd.s32 4294967294, %s1533_s23  }
  0x10   : > { %s31_s26 = sadd.s32 1, %s1529_s22  ;;  %s163_s27 = sadd.s32 1, %s1521_s20 }
  0x11   : > { %p32_p0 = scmp.ge.s32.totalorder %s31_s26, 2  ;;  %p173_p1 = scmp.ne.s32.totalorder %s1521_s20, %s1517_s19 }
  0x12   : > { %p174_p2 = scmp.eq.s32.totalorder %s1186_s24, 1  ;;  %p179_p3 = scmp.ne.s32.totalorder %s1517_s19, %s1513_s18 }
  0x13   : > { %s2661_s26 = smov (%p32_p0, %s31_s26), 0  ;;  %p180_p5 = scmp.eq.s32.totalorder %s1187_s25, 1 }
  0x14   : > { %2629 = sst [smem:[#allocation20_spill]] %s2661_s26  ;;  %p1616_p4 = por %p174_p2, %p173_p1 }
  0x15   : > { %s158_s29 = ssub.s32 %s1529_s22, %s2661_s26  ;;  %p1188_p6 = scmp.ge.s32.totalorder %s1533_s23, 1 }
  0x16   : > { %p161_p7 = scmp.eq.s32.totalorder %s158_s29, 0  ;;  %p1623_p8 = por %p180_p5, %p179_p3 }
  0x17   : > { %p187_p9 = scmp.lt.s32.totalorder %s1533_s23, 3  ;;  %p1635_p11 = scmp.eq.s32.totalorder %s1186_s24, 0 }
  0x18   : > { %s2631_s30 = scalar_select %p1623_p8, 1, 0 }
  0x19   : > { %s1629_s6 = scalar_select %p161_p7, %s1521_s20, %s163_s27  }
  0x1a   : > { %p1631_p10 = pnand %p1188_p6, %p187_p9  ;;  %s1535_s9 = smov [#allocation9]  }
  0x1b   : > { %2632 = sst [smem:[#allocation21_spill]] %s1629_s6  ;;  %s234_s10 = sshll.u32 %s1535_s9, 4  ;;  %s235_s10 = int_to_ptr.vmem [resolvable:$true] %s234_s10 }
  0x1c   : > { %p1234_p12 = pneg %p1631_p10  ;;  %s1352_s12 = scalar_lea.vmem %s235_s10, 384 }
  0x1d   : > { %p1353_p1 = scmp.ne.s32.totalorder %s235_s10, %s1352_s12  ;;  %p1360_p5 = scmp.lt.s32.totalorder %s235_s10, %s235_s10 }
  0x1e   : > { %p1643_p13 = pnand %p1635_p11, %p1234_p12  ;;  %p1361_p6 = scmp.lt.s32.totalorder %s1352_s12, %s1352_s12 }
  0x20   : > { %p1343_p0 = pneg %p1643_p13  ;;  %p1362_p7 = por %p1361_p6, %p1360_p5 }
  0x22   : > { %p1355_p2 = pnand %p1353_p1, %p1343_p0 }
  0x24   : > { %p1356_p3 = pneg %p1355_p2 }
  0x26   : > { %p1363_p9 = pnand %p1362_p7, %p1356_p3 }
  0x28   : > { %1366 = shalt.err (!%p1363_p9)
}
  0x29   : > { %s1536_s13 = smov 128   ;;  %s1537_s14 = smov 8  }
  0x2a   : > { %s2636_s3 = sld [smem:[#allocation25_spill]]  ;;  %s1538_s17 = smov [#allocation2]  }
  0x2b   : > { %s2637_s0 = sld [smem:[#allocation22_spill]]  ;;  %s1539_s27 = smov [#allocation6]  }
  0x2c   : > { %s2638_s1 = sld [smem:[#allocation23_spill]]  ;;  %s1540_s12 = smov [#allocation8]  }
  0x2d   : > { %s219_s26 = sshll.u32 %s1540_s12, 4  ;;  %s1541_s22 = smov [#allocation11]   ;;  %s220_s26 = int_to_ptr.vmem [resolvable:$true] %s219_s26 }
  0x2e   : > { %s249_s6 = sshll.u32 %s1541_s22, 4  ;;  %s1400_s15 = scalar_lea.vmem %s220_s26, 1024  ;;  %s250_s6 = int_to_ptr.vmem [resolvable:$true] %s249_s6 }
  0x2f   : > { %p1401_p12 = scmp.ne.s32.totalorder %s220_s26, %s1400_s15  ;;  %p1408_p3 = scmp.lt.s32.totalorder %s220_s26, %s220_s26 }
  0x30   : > { %1246 = dma.hbm_to_vmem [thread:$0]  (!%p1643_p13), %s2636_s3, 384, %s235_s10, [#allocation10], %s1536_s13, %s1536_s13, %s1537_s14  }
  0x31   : > { %1237 = dma.hbm_to_smem (!%p1643_p13), %s2637_s0, 32, %s1538_s17, [#allocation5]  }
  0x32   : > { %1240 = dma.hbm_to_smem (!%p1643_p13), %s2638_s1, 32, %s1539_s27, [#allocation7]  }
  0x33   : > { %p1403_p1 = pnand %p1401_p12, %p1343_p0  ;;  %p1409_p5 = scmp.lt.s32.totalorder %s1400_s15, %s1400_s15 }
  0x35   : > { %p1404_p2 = pneg %p1403_p1  ;;  %p1410_p6 = por %p1409_p5, %p1408_p3 }
  0x37   : > { %p1411_p7 = pnand %p1410_p6, %p1404_p2 }
  0x39   : > { %1414 = shalt.err (!%p1411_p7)
}
  0x3a   : > { %s2639_s2 = sld [smem:[#allocation24_spill]]  ;;  %s1426_s16 = scalar_lea.vmem %s250_s6, 512 }
  0x3b   : > { %p1427_p9 = scmp.ne.s32.totalorder %s250_s6, %s1426_s16  ;;  %p1434_p8 = scmp.lt.s32.totalorder %s250_s6, %s250_s6 }
  0x3c   : > { %p1435_p3 = scmp.lt.s32.totalorder %s1426_s16, %s1426_s16 }
  0x3d   : > { %p1429_p12 = pnand %p1427_p9, %p1343_p0 }
  0x3e   : > { %p1436_p2 = por %p1435_p3, %p1434_p8 }
  0x3f   : > { %p1430_p1 = pneg %p1429_p12 }
  0x40   : > { %1243 = dma.hbm_to_vmem [thread:$0]  (!%p1643_p13), %s2639_s2, 1024, %s220_s26, [#allocation3], %s1536_s13, %s1536_s13, %s1537_s14  }
  0x41   : > { %p1437_p5 = pnand %p1436_p2, %p1430_p1 }
  0x43   : > { %1440 = shalt.err (!%p1437_p5)
}
  0x44   : > { %s2640_s4 = sld [smem:[#allocation26_spill]] }
  0x46   : > { %265 = sbr.rel (%p1631_p10) target bundleno = 256 (0x100), region = 40 }
  0x4a   : > { %1249 = dma.hbm_to_vmem [thread:$0]  (!%p1643_p13), %s2640_s4, 512, %s250_s6, [#allocation10], %s1536_s13, %s1536_s13, %s1537_s14  }
  0x4b   : > { %1492 = dma.done.wait (%p1635_p11), [#allocation5], 32  }
  0x4c   : > { %1494 = vsyncadd (%p1635_p11), [#allocation5], 4294967264 }
  0x4d   : > { %1496 = dma.done.wait (%p1635_p11), [#allocation7], 32  }
  0x4e   : > { %1498 = vsyncadd (%p1635_p11), [#allocation7], 4294967264 }
  0x4f   : > { %1500 = dma.done.wait (%p1635_p11), [#allocation3], 1024  }
  0x50   : > { %1502 = vsyncadd (%p1635_p11), [#allocation3], 4294966272 }
  0x51   : > { %1504 = dma.done.wait (%p1635_p11), [#allocation10], 896  }
  0x52   : > { %1506 = vsyncadd (%p1635_p11), [#allocation10], 4294966400 }
  0x53   : > { %287 = sfence }
  0x54   : > { %s1711_s26 = sshll.u32 %s1525_s21, 7  ;;  %v1722_v0 = vld [vmem:[#allocation11] sm:$0xff]  ;;  %v1729_v1 = vld [vmem:[#allocation11 + $0x8] sm:$0xff]  ;;  %v1746_v4 = vld [vmem:[#allocation11 + $0x10] sm:$0xff]  ;;  %vm1542_vm13 = vmmov 1  }
  0x55   : > { %s1714_s6 = sld [smem:[#allocation2 + %s1711_s26]]  ;;  %s2620_s7 = sadd.s32 1, %s1711_s26  ;;  %v834_v2 = vmul.f32 %v1722_v0, %v1722_v0  ;;  %v1741_v3 = vmul.f32 %v1729_v1, %v1729_v1  ;;  %v1754_v5 = vld [vmem:[#allocation8] sm:$0xff]  ;;  %v1756_v6 = vld [vmem:[#allocation8 + $0x8] sm:$0xff]  ;;  %v1766_v10 = vmul.f32 %v1746_v4, %v1746_v4  ;;  %v1771_v11 = vld [vmem:[#allocation11 + $0x18] sm:$0xff]  ;;  %v1870_v48 = vmul.f32 %v1746_v4, %v1729_v1 }
  0x56   : > { %s2619_s11 = sadd.s32 2, %s1711_s26  ;;  %s1720_s8 = sld [smem:[#allocation2 + %s2620_s7]]  ;;  %v1781_v14 = vld [vmem:[#allocation8 + $0x10] sm:$0xff]  ;;  %v1790_v17 = vmul.f32 %v1771_v11, %v1771_v11  ;;  %v1803_v21 = vld [vmem:[#allocation8 + $0x18] sm:$0xff]  ;;  %v1824_v30 = vld [vmem:[#allocation8 + $0x20] sm:$0xff]  ;;  %v1874_v49 = vmul.f32 %v1771_v11, %v1722_v0  ;;  %v1896_v60 = vmul.f32 %v1771_v11, %v1729_v1  ;;  %v1900_v61 = vmul.f32 %v1746_v4, %v1722_v0 }
  0x57   : > { %s1726_s13 = sld [smem:[#allocation2 + %s2619_s11]]  ;;  %s311_s14 = sadd.s32 3, %s1711_s26  ;;  %v836_v9 = vadd.f32 %v1741_v3, %v834_v2  ;;  %v1842_v37 = vld [vmem:[#allocation8 + $0x28] sm:$0xff]  ;;  %v1855_v41 = vld [vmem:[#allocation8 + $0x30] sm:$0xff]  ;;  %v1885_v54 = vld [vmem:[#allocation8 + $0x38] sm:$0xff]  ;;  %v1904_v62 = vmul.f32 %v1771_v11, %v1746_v4 }
  0x58   : > { %s1731_s25 = sld [smem:[#allocation2 + %s311_s14]]  ;;  %s313_s27 = sadd.s32 4, %s1711_s26  ;;  %v843_v63 = vadd.f32 %v1790_v17, %v1766_v10  ;;  %v848_v2 = vsub.f32 %v1870_v48, %v1874_v49 }
  0x59   : > { %s1734_s29 = sld [smem:[#allocation2 + %s313_s27]]  ;;  %s315_s9 = sadd.s32 5, %s1711_s26  ;;  %v838_v16 = vadd.f32 %v1766_v10, %v836_v9 }
  0x5a   : > { %s1743_s12 = sld [smem:[#allocation2 + %s315_s9]]  ;;  %s317_s15 = sadd.s32 6, %s1711_s26 }
  0x5b   : > { %s1748_s10 = sld [smem:[#allocation2 + %s317_s15]]  ;;  %s319_s22 = sadd.s32 7, %s1711_s26  ;;  %v522_v7 = vstv %s1714_s6  ;;  %v840_v24 = vadd.f32 %v1790_v17, %v838_v16 }
  0x5c   : > { %s1751_s16 = sld [smem:[#allocation2 + %s319_s22]]  ;;  %s321_s17 = sadd.s32 8, %s1711_s26  ;;  %v524_v8 = vstv %s1720_s8  ;;  %v523_v12 = vmul.f32 %v522_v7, %v1754_v5  ;;  %v1915_v7 = vadd.f32 %v1790_v17, %v1741_v3 }
  0x5d   : > { %s1760_s24 = sld [smem:[#allocation2 + %s321_s17]]  ;;  %s323_s14 = sadd.s32 9, %s1711_s26  ;;  %v525_v13 = vmul.f32 %v524_v8, %v1756_v6  ;;  %v527_v15 = vstv %s1726_s13  ;;  %1323 = vrcp.f32 %v840_v24  ;;  %v1919_v8 = vmul.f32 %v1729_v1, %v1722_v0 }
  0x5e   : > { %s1768_s27 = sld [smem:[#allocation2 + %s323_s14]]  ;;  %s325_s9 = sadd.s32 10, %s1711_s26  ;;  %v528_v19 = vmul.f32 %v527_v15, %v1781_v14  ;;  %v530_v22 = vstv %s1731_s25 }
  0x5f   : > { %s1773_s6 = sld [smem:[#allocation2 + %s325_s9]]  ;;  %s327_s8 = sadd.s32 11, %s1711_s26  ;;  %v526_v18 = vadd.f32 %v525_v13, %v523_v12  ;;  %v531_v28 = vmul.f32 %v530_v22, %v1803_v21  ;;  %v533_v31 = vstv %s1734_s29  ;;  %v1928_v13 = vadd.f32 %v1900_v61, %v1896_v60 }
  0x60   : > { %s1778_s15 = sld [smem:[#allocation2 + %s327_s8]]  ;;  %s329_s22 = sadd.s32 12, %s1711_s26  ;;  %v534_v35 = vmul.f32 %v533_v31, %v1824_v30  ;;  %v536_v38 = vstv %s1743_s12  ;;  %v861_v24 = vsub.f32 %v1904_v62, %v1919_v8 }
  0x61   : > { %s1784_s17 = sld [smem:[#allocation2 + %s329_s22]]  ;;  %s331_s14 = sadd.s32 13, %s1711_s26  ;;  %v529_v27 = vadd.f32 %v528_v19, %v526_v18  ;;  %v537_v43 = vmul.f32 %v536_v38, %v1842_v37  ;;  %v539_v44 = vstv %s1748_s10  ;;  %v1941_v18 = vadd.f32 %v1874_v49, %v1870_v48  ;;  %v1981_v38 = vld [vmem:[#allocation9] sm:$0xff] }
  0x62   : > { %s1792_s9 = sld [smem:[#allocation2 + %s331_s14]]  ;;  %s333_s8 = sadd.s32 14, %s1711_s26  ;;  %v540_v50 = vmul.f32 %v539_v44, %v1855_v41  ;;  %v542_v51 = vstv %s1751_s16  ;;  %v863_v19 = vsub.f32 %v1896_v60, %v1900_v61 }
  0x63   : > { %s1795_s11 = sld [smem:[#allocation2 + %s333_s8]]  ;;  %s335_s7 = sadd.s32 15, %s1711_s26  ;;  %v545_v20 = vstv %s1760_s24  ;;  %v532_v34 = vadd.f32 %v531_v28, %v529_v27  ;;  %v543_v9 = vmul.f32 %v542_v51, %v1885_v54 }
  0x64   : > { %s1800_s13 = sld [smem:[#allocation2 + %s335_s7]]  ;;  %s337_s22 = sadd.s32 16, %s1711_s26  ;;  %v547_v23 = vstv %s1768_s27  ;;  %v546_v25 = vmul.f32 %v545_v20, %v1754_v5  ;;  %v1947_v20 = vadd.f32 %v1766_v10, %v1741_v3 }
  0x65   : > { %s1807_s14 = sld [smem:[#allocation2 + %s337_s22]]  ;;  %s339_s8 = sadd.s32 17, %s1711_s26  ;;  %v548_v26 = vmul.f32 %v547_v23, %v1756_v6  ;;  %v550_v29 = vstv %s1773_s6  ;;  %v535_v42 = vadd.f32 %v534_v35, %v532_v34 }
  0x66   : > { %s1811_s0 = sld [smem:[#allocation2 + %s339_s8]]  ;;  %s341_s1 = sadd.s32 18, %s1711_s26  ;;  %v551_v33 = vmul.f32 %v550_v29, %v1781_v14  ;;  %v553_v36 = vstv %s1778_s15 }
  0x67   : > { %s1816_s7 = sld [smem:[#allocation2 + %s341_s1]]  ;;  %s343_s24 = sadd.s32 19, %s1711_s26  ;;  %v549_v32 = vadd.f32 %v548_v26, %v546_v25  ;;  %v554_v40 = vmul.f32 %v553_v36, %v1803_v21  ;;  %v556_v45 = vstv %s1784_s17  ;;  %v538_v55 = vadd.f32 %v537_v43, %v535_v42 }
  0x68   : > { %s1821_s25 = sld [smem:[#allocation2 + %s343_s24]]  ;;  %s345_s27 = sadd.s32 20, %s1711_s26  ;;  %v557_v53 = vmul.f32 %v556_v45, %v1824_v30  ;;  %v559_v56 = vstv %s1792_s9  ;;  %v1959_v25 = vadd.f32 %v1919_v8, %v1904_v62 }
  0x69   : > { %s1827_s22 = sld [smem:[#allocation2 + %s345_s27]]  ;;  %s347_s8 = sadd.s32 21, %s1711_s26  ;;  %v552_v39 = vadd.f32 %v551_v33, %v549_v32  ;;  %v560_v12 = vmul.f32 %v559_v56, %v1842_v37  ;;  %v541_v0 = vadd.f32 %v540_v50, %v538_v55  ;;  %v562_v1 = vstv %s1795_s11 }
  0x6a   : > { %s1830_s1 = sld [smem:[#allocation2 + %s347_s8]]  ;;  %s349_s2 = sadd.s32 22, %s1711_s26  ;;  %v1324_v4 = vpop.eup %1323  ;;  %v565_v22 = vstv %s1800_s13  ;;  %v563_v10 = vmul.f32 %v562_v1, %v1855_v41 }
  0x6b   : > { %s1834_s6 = sld [smem:[#allocation2 + %s349_s2]]  ;;  %s351_s24 = sadd.s32 23, %s1711_s26  ;;  %v568_v46 = vstv %s1807_s14  ;;  %v555_v52 = vadd.f32 %v554_v40, %v552_v39  ;;  %v1953_v23 = vmul.f32 2.0, %v1324_v4  ;;  %v1970_v28 = vadd.f32 %v543_v9, %v541_v0  ;;  %v2022_v9 = vld [vmem:[#allocation9 + $0x8] sm:$0xff] }
  0x6c   : > { %s1839_s29 = sld [smem:[#allocation2 + %s351_s24]]  ;;  %s353_s27 = sadd.s32 24, %s1711_s26  ;;  %v570_v47 = vstv %s1811_s0  ;;  %v569_v57 = vmul.f32 %v568_v46, %v1754_v5  ;;  %v566_v33 = vmul.f32 %v565_v22, %v1885_v54 }
  0x6d   : > { %s1845_s8 = sld [smem:[#allocation2 + %s353_s27]]  ;;  %s355_s2 = sadd.s32 25, %s1711_s26  ;;  %v571_v58 = vmul.f32 %v570_v47, %v1756_v6  ;;  %v573_v59 = vstv %s1816_s7  ;;  %v558_v11 = vadd.f32 %v557_v53, %v555_v52  ;;  %v844_v43 = vmul.f32 %v843_v63, %v1953_v23 }
  0x6e   : > { %s1848_s3 = sld [smem:[#allocation2 + %s355_s2]]  ;;  %s357_s4 = sadd.s32 26, %s1711_s26  ;;  %v574_v16 = vmul.f32 %v573_v59, %v1781_v14  ;;  %v576_v17 = vstv %s1821_s25  ;;  %v803_v53 = vmul.f32 %v1981_v38, %v1970_v28 }
  0x6f   : > { %s1852_s15 = sld [smem:[#allocation2 + %s357_s4]]  ;;  %s359_s24 = sadd.s32 27, %s1711_s26  ;;  %v572_v15 = vadd.f32 %v571_v58, %v569_v57  ;;  %v561_v3 = vadd.f32 %v560_v12, %v558_v11  ;;  %v577_v31 = vmul.f32 %v576_v17, %v1803_v21  ;;  %v579_v34 = vstv %s1827_s22 }
  0x70   : > { %s1860_s12 = sld [smem:[#allocation2 + %s359_s24]]  ;;  %s361_s27 = sadd.s32 28, %s1711_s26  ;;  %v582_v35 = vstv %s1830_s1  ;;  %v580_v51 = vmul.f32 %v579_v34, %v1824_v30  ;;  %v2015_v58 = vmul.f32 %v848_v2, %v1953_v23  ;;  %v2024_v11 = vsub.f32 1.0, %v844_v43 }
  0x71   : > { %s1865_s2 = sld [smem:[#allocation2 + %s361_s27]]  ;;  %s363_s4 = sadd.s32 29, %s1711_s26  ;;  %v575_v29 = vadd.f32 %v574_v16, %v572_v15  ;;  %v585_v39 = vstv %s1834_s6  ;;  %v564_v44 = vadd.f32 %v563_v10, %v561_v3  ;;  %v583_v55 = vmul.f32 %v582_v35, %v1842_v37 }
  0x72   : > { %s1876_s10 = sld [smem:[#allocation2 + %s363_s4]]  ;;  %s365_s17 = sadd.s32 30, %s1711_s26  ;;  %v2008_v56 = vmul.f32 %v585_v39, %v1855_v41  ;;  %v588_v57 = vstv %s1839_s29  ;;  %v2034_v12 = vmul.f32 %v1928_v13, %v1953_v23  ;;  %v857_v16 = vmul.f32 %v1915_v7, %v1953_v23 }
  0x73   : > { %s1882_s0 = sld [smem:[#allocation2 + %s365_s17]]  ;;  %s367_s14 = sadd.s32 31, %s1711_s26  ;;  %v591_v26 = vstv %s1845_s8  ;;  %v578_v50 = vadd.f32 %v577_v31, %v575_v29  ;;  %v2029_v48 = vadd.f32 %v566_v33, %v564_v44  ;;  %v589_v35 = vmul.f32 %v588_v57, %v1885_v54 }
  0x74   : > { %s1890_s24 = sld [smem:[#allocation2 + %s367_s14]]  ;;  %s369_s27 = sadd.s32 32, %s1711_s26  ;;  %v593_v27 = vstv %s1848_s3  ;;  %v592_v40 = vmul.f32 %v591_v26, %v1754_v5  ;;  %v2076_v43 = vsub.f32 1.0, %v857_v16  ;;  %v2082_v44 = vmul.f32 %v861_v24, %v1953_v23 }
  0x75   : > { %s1906_s16 = sld [smem:[#allocation2 + %s369_s27]]  ;;  %s371_s9 = sadd.s32 33, %s1711_s26  ;;  %v594_v42 = vmul.f32 %v593_v27, %v1756_v6  ;;  %v596_v45 = vstv %s1852_s15  ;;  %v581_v0 = vadd.f32 %v580_v51, %v578_v50  ;;  %v804_v3 = vmul.f32 %v2022_v9, %v2029_v48 }
  0x76   : > { %s1921_s7 = sld [smem:[#allocation2 + %s371_s9]]  ;;  %s373_s4 = sadd.s32 34, %s1711_s26  ;;  %v597_v63 = vmul.f32 %v596_v45, %v1781_v14  ;;  %v599_v4 = vstv %s1860_s12 }
  0x77   : > { %s1930_s17 = sld [smem:[#allocation2 + %s373_s4]]  ;;  %s375_s14 = sadd.s32 35, %s1711_s26  ;;  %v595_v59 = vadd.f32 %v594_v42, %v592_v40  ;;  %v600_v17 = vmul.f32 %v599_v4, %v1803_v21  ;;  %v602_v26 = vstv %s1865_s2  ;;  %v584_v34 = vadd.f32 %v583_v55, %v581_v0 }
  0x78   : > { %s1935_s27 = sld [smem:[#allocation2 + %s375_s14]]  ;;  %s377_s9 = sadd.s32 36, %s1711_s26  ;;  %v605_v40 = vstv %s1876_s10  ;;  %v2074_v42 = vmul.f32 %v1941_v18, %v1953_v23 }
  0x79   : > { %s1949_s11 = sld [smem:[#allocation2 + %s377_s9]]  ;;  %s379_s4 = sadd.s32 37, %s1711_s26  ;;  %v598_v10 = vadd.f32 %v597_v63, %v595_v59  ;;  %v587_v51 = vadd.f32 %v2008_v56, %v584_v34  ;;  %v608_v57 = vstv %s1882_s0 }
  0x7a   : > { %s1961_s25 = sld [smem:[#allocation2 + %s379_s4]]  ;;  %s381_s14 = sadd.s32 38, %s1711_s26  ;;  %v611_v59 = vstv %s1890_s24 }
  0x7b   : > { %s1967_s13 = sld [smem:[#allocation2 + %s381_s14]]  ;;  %s383_s9 = sadd.s32 39, %s1711_s26  ;;  %v614_v32 = vstv %s1906_s16  ;;  %v601_v45 = vadd.f32 %v600_v17, %v598_v10  ;;  %v2130_v10 = vmul.f32 %v863_v19, %v1953_v23  ;;  %v2146_v60 = vadd.f32 %v589_v35, %v587_v51 }
  0x7c   : > { %s1974_s4 = sld [smem:[#allocation2 + %s383_s9]]  ;;  %s385_s20 = sadd.s32 40, %s1711_s26  ;;  %v616_v36 = vstv %s1921_s7  ;;  %v615_v46 = vmul.f32 %v614_v32, %v1754_v5  ;;  %v612_v19 = vmul.f32 %v611_v59, %v1885_v54 }
  0x7d   : > { %s1983_s3 = sld [smem:[#allocation2 + %s385_s20]]  ;;  %s387_s8 = sadd.s32 41, %s1711_s26  ;;  %v617_v47 = vmul.f32 %v616_v36, %v1756_v6  ;;  %v619_v52 = vstv %s1930_s17 }
  0x7e   : > { %s1990_s16 = sld [smem:[#allocation2 + %s387_s8]]  ;;  %s389_s22 = sadd.s32 42, %s1711_s26  ;;  %v620_v2 = vmul.f32 %v619_v52, %v1781_v14  ;;  %v622_v1 = vstv %s1935_s27  ;;  %v606_v52 = vmul.f32 %v605_v40, %v1842_v37 }
  0x7f   : > { %s1996_s20 = sld [smem:[#allocation2 + %s389_s22]]  ;;  %s391_s1 = sadd.s32 43, %s1711_s26  ;;  %v618_v49 = vadd.f32 %v617_v47, %v615_v46  ;;  %v623_v31 = vmul.f32 %v622_v1, %v1803_v21  ;;  %v625_v32 = vstv %s1949_s11  ;;  %v603_v46 = vmul.f32 %v602_v26, %v1824_v30 }
  0x80   : > { %s2003_s6 = sld [smem:[#allocation2 + %s391_s1]]  ;;  %s393_s15 = sadd.s32 44, %s1711_s26  ;;  %v626_v18 = vmul.f32 %v625_v32, %v1824_v30  ;;  %v2089_v47 = vadd.f32 %v804_v3, %v803_v53  ;;  %v628_v8 = vstv %s1961_s25  ;;  %v609_v26 = vmul.f32 %v608_v57, %v1855_v41 }
  0x81   : > { %s2017_s7 = sld [smem:[#allocation2 + %s393_s15]]  ;;  %s395_s17 = sadd.s32 45, %s1711_s26  ;;  %v621_v29 = vadd.f32 %v620_v2, %v618_v49  ;;  %v604_v56 = vadd.f32 %v603_v46, %v601_v45  ;;  %v629_v49 = vmul.f32 %v628_v8, %v1842_v37 }
  0x82   : > { %s2026_s29 = sld [smem:[#allocation2 + %s395_s17]]  ;;  %s397_s14 = sadd.s32 46, %s1711_s26 }
  0x83   : > { %s2036_s12 = sld [smem:[#allocation2 + %s397_s14]]  ;;  %s399_s9 = sadd.s32 47, %s1711_s26  ;;  %v637_v15 = vstv %s1983_s3  ;;  %v624_v62 = vadd.f32 %v623_v31, %v621_v29  ;;  %v868_v29 = vmul.f32 %v1947_v20, %v1953_v23  ;;  %v607_v61 = vadd.f32 %v606_v52, %v604_v56 }
  0x84   : > { %s2043_s8 = sld [smem:[#allocation2 + %s399_s9]]  ;;  %s401_s22 = sadd.s32 48, %s1711_s26  ;;  %v638_v13 = vmul.f32 %v637_v15, %v1754_v5  ;;  %v639_v22 = vstv %s1990_s16  ;;  %v631_v15 = vstv %s1967_s13  ;;  %v634_v20 = vstv %s1974_s4 }
  0x85   : > { %s2051_s1 = sld [smem:[#allocation2 + %s401_s22]]  ;;  %s403_s27 = sadd.s32 49, %s1711_s26  ;;  %v640_v7 = vmul.f32 %v639_v22, %v1756_v6  ;;  %v642_v27 = vstv %s1996_s20  ;;  %v627_v1 = vadd.f32 %v626_v18, %v624_v62  ;;  %v632_v31 = vmul.f32 %v631_v15, %v1855_v41 }
  0x86   : > { %s2057_s3 = sld [smem:[#allocation2 + %s403_s27]]  ;;  %s405_s15 = sadd.s32 50, %s1711_s26  ;;  %v643_v33 = vmul.f32 %v642_v27, %v1781_v14  ;;  %v645_v39 = vstv %s2003_s6  ;;  %v2139_v27 = vmul.f32 %v1959_v25, %v1953_v23  ;;  %v870_v18 = vmul.f32 %v2024_v11, %v1970_v28 }
  0x87   : > { %s2063_s16 = sld [smem:[#allocation2 + %s405_s15]]  ;;  %s407_s17 = sadd.s32 51, %s1711_s26  ;;  %v641_v36 = vadd.f32 %v640_v7, %v638_v13  ;;  %v646_v50 = vmul.f32 %v645_v39, %v1803_v21  ;;  %v648_v53 = vstv %s2017_s7  ;;  %v630_v25 = vadd.f32 %v629_v49, %v627_v1 }
  0x88   : > { %s2068_s2 = sld [smem:[#allocation2 + %s407_s17]]  ;;  %s409_s20 = sadd.s32 52, %s1711_s26  ;;  %v649_v17 = vmul.f32 %v648_v53, %v1824_v30  ;;  %v651_v13 = vstv %s2026_s29  ;;  %v610_v51 = vadd.f32 %v609_v26, %v607_v61  ;;  %v635_v52 = vmul.f32 %v634_v20, %v1885_v54 }
  0x89   : > { %s2084_s11 = sld [smem:[#allocation2 + %s409_s20]]  ;;  %s411_s6 = sadd.s32 53, %s1711_s26  ;;  %v644_v24 = vadd.f32 %v643_v33, %v641_v36  ;;  %v652_v32 = vmul.f32 %v651_v13, %v1842_v37  ;;  %v2155_v33 = vld [vmem:[#allocation9 + $0x10] sm:$0xff]  ;;  %v654_v34 = vstv %s2036_s12  ;;  %v633_v57 = vadd.f32 %v632_v31, %v630_v25 }
  0x8a   : > { %s2091_s10 = sld [smem:[#allocation2 + %s411_s6]]  ;;  %s413_s14 = sadd.s32 54, %s1711_s26  ;;  %v657_v59 = vstv %s2043_s8  ;;  %v613_v13 = vadd.f32 %v612_v19, %v610_v51 }
  0x8b   : > { %s2096_s9 = sld [smem:[#allocation2 + %s413_s14]]  ;;  %s415_s22 = sadd.s32 55, %s1711_s26  ;;  %v660_v55 = vstv %s2051_s1  ;;  %v647_v16 = vadd.f32 %v646_v50, %v644_v24  ;;  %v806_v24 = vmul.f32 %v2155_v33, %v2146_v60  ;;  %v871_v50 = vmul.f32 %v2074_v42, %v2029_v48 }
  0x8c   : > { %s2103_s27 = sld [smem:[#allocation2 + %s415_s22]]  ;;  %s417_s15 = sadd.s32 56, %s1711_s26  ;;  %v661_v63 = vmul.f32 %v660_v55, %v1754_v5  ;;  %v662_v4 = vstv %s2057_s3  ;;  %v655_v55 = vmul.f32 %v654_v34, %v1855_v41 }
  0x8d   : > { %s2110_s25 = sld [smem:[#allocation2 + %s417_s15]]  ;;  %s419_s17 = sadd.s32 57, %s1711_s26  ;;  %v663_v2 = vmul.f32 %v662_v4, %v1756_v6  ;;  %v665_v0 = vstv %s2063_s16  ;;  %v650_v23 = vadd.f32 %v649_v17, %v647_v16  ;;  %v807_v15 = vadd.f32 %v806_v24, %v2089_v47 }
  0x8e   : > { %s2116_s7 = sld [smem:[#allocation2 + %s419_s17]]  ;;  %s421_s0 = sadd.s32 58, %s1711_s26  ;;  %v666_v3 = vmul.f32 %v665_v0, %v1781_v14  ;;  %v668_v7 = vstv %s2068_s2  ;;  %v2195_v0 = vsub.f32 1.0, %v868_v29  ;;  %v872_v16 = vadd.f32 %v871_v50, %v870_v18 }
  0x8f   : > { %s2121_s24 = sld [smem:[#allocation2 + %s421_s0]]  ;;  %s423_s1 = sadd.s32 59, %s1711_s26  ;;  %v664_v22 = vadd.f32 %v663_v2, %v661_v63  ;;  %v669_v36 = vmul.f32 %v668_v7, %v1803_v21  ;;  %v671_v40 = vstv %s2084_s11  ;;  %v653_v53 = vadd.f32 %v652_v32, %v650_v23 }
  0x90   : > { %s2132_s13 = sld [smem:[#allocation2 + %s423_s1]]  ;;  %s425_s3 = sadd.s32 60, %s1711_s26  ;;  %v672_v4 = vmul.f32 %v671_v40, %v1824_v30  ;;  %v674_v56 = vstv %s2091_s10  ;;  %v873_v17 = vmul.f32 %v2130_v10, %v2146_v60  ;;  %v2212_v47 = vadd.f32 %v635_v52, %v633_v57 }
  0x91   : > { %s2143_s29 = sld [smem:[#allocation2 + %s425_s3]]  ;;  %s427_s16 = sadd.s32 61, %s1711_s26  ;;  %v667_v35 = vadd.f32 %v666_v3, %v664_v22  ;;  %v656_v22 = vadd.f32 %v655_v55, %v653_v53  ;;  %v658_v3 = vmul.f32 %v657_v59, %v1885_v54  ;;  %v677_v26 = vstv %s2096_s9 }
  0x92   : > { %s2150_s2 = sld [smem:[#allocation2 + %s427_s16]]  ;;  %s429_s20 = sadd.s32 62, %s1711_s26  ;;  %v675_v29 = vmul.f32 %v674_v56, %v1842_v37  ;;  %v678_v23 = vmul.f32 %v677_v26, %v1855_v41  ;;  %v2246_v51 = vadd.f32 %v807_v15, %v613_v13  ;;  %v2248_v52 = vadd.f32 %v873_v17, %v872_v16 }
  0x93   : > { %s2157_s6 = sld [smem:[#allocation2 + %s429_s20]]  ;;  %s431_s14 = sadd.s32 63, %s1711_s26  ;;  %v683_v39 = vstv %s2110_s25  ;;  %v670_v63 = vadd.f32 %v669_v36, %v667_v35  ;;  %v2232_v36 = vadd.f32 %v658_v3, %v656_v22  ;;  %v811_v57 = vmul.f32 %v1981_v38, %v2212_v47 }
  0x94   : > { %s2163_s22 = sld [smem:[#allocation2 + %s431_s14]]  ;;  %s433_s15 = sadd.s32 64, %s1711_s26  ;;  %v684_v45 = vmul.f32 %v683_v39, %v1754_v5  ;;  %v685_v46 = vstv %s2116_s7  ;;  %v680_v39 = vstv %s2103_s27  ;;  %v2258_v59 = vmul.f32 %v2015_v58, %v2212_v47 }
  0x95   : > { %s2171_s4 = sld [smem:[#allocation2 + %s433_s15]]  ;;  %s435_s12 = sadd.s32 65, %s1711_s26  ;;  %v686_v62 = vmul.f32 %v685_v46, %v1756_v6  ;;  %v688_v8 = vstv %s2121_s24  ;;  %v673_v7 = vadd.f32 %v672_v4, %v670_v63  ;;  %v681_v63 = vmul.f32 %v680_v39, %v1885_v54 }
  0x96   : > { %s2180_s11 = sld [smem:[#allocation2 + %s435_s12]]  ;;  %s437_s25 = sadd.s32 66, %s1711_s26  ;;  %v689_v2 = vmul.f32 %v688_v8, %v1781_v14  ;;  %v691_v1 = vstv %s2132_s13  ;;  %v812_v56 = vmul.f32 %v2022_v9, %v2232_v36 }
  0x97   : > { %s2185_s17 = sld [smem:[#allocation2 + %s437_s25]]  ;;  %s439_s7 = sadd.s32 67, %s1711_s26  ;;  %v687_v49 = vadd.f32 %v686_v62, %v684_v45  ;;  %v692_v31 = vmul.f32 %v691_v1, %v1803_v21  ;;  %v694_v32 = vstv %s2143_s29  ;;  %v676_v46 = vadd.f32 %v675_v29, %v673_v7 }
  0x98   : > { %s2190_s0 = sld [smem:[#allocation2 + %s439_s7]]  ;;  %s441_s24 = sadd.s32 68, %s1711_s26  ;;  %v695_v50 = vmul.f32 %v694_v32, %v1824_v30  ;;  %v697_v53 = vstv %s2150_s2 }
  0x99   : > { %s2197_s1 = sld [smem:[#allocation2 + %s441_s24]]  ;;  %s443_s3 = sadd.s32 69, %s1711_s26  ;;  %v690_v19 = vadd.f32 %v689_v2, %v687_v49  ;;  %v2269_v49 = vmul.f32 %v2076_v43, %v2232_v36  ;;  %v679_v2 = vadd.f32 %v678_v23, %v676_v46  ;;  %v698_v13 = vmul.f32 %v697_v53, %v1842_v37 }
  0x9a   : > { %s2204_s8 = sld [smem:[#allocation2 + %s443_s3]]  ;;  %s445_s10 = sadd.s32 70, %s1711_s26  ;;  %v700_v26 = vstv %s2157_s6  ;;  %v703_v7 = vstv %s2163_s22 }
  0x9b   : > { %s2209_s16 = sld [smem:[#allocation2 + %s445_s10]]  ;;  %s447_s13 = sadd.s32 71, %s1711_s26  ;;  %v706_v61 = vstv %s2171_s4  ;;  %v693_v24 = vadd.f32 %v692_v31, %v690_v19  ;;  %v2304_v39 = vadd.f32 %v681_v63, %v679_v2 }
  0x9c   : > { %s2216_s20 = sld [smem:[#allocation2 + %s447_s13]]  ;;  %s449_s14 = sadd.s32 72, %s1711_s26  ;;  %v707_v25 = vmul.f32 %v706_v61, %v1754_v5  ;;  %v708_v20 = vstv %s2180_s11 }
  0x9d   : > { %s2222_s9 = sld [smem:[#allocation2 + %s449_s14]]  ;;  %s451_s15 = sadd.s32 73, %s1711_s26  ;;  %v709_v34 = vmul.f32 %v708_v20, %v1756_v6  ;;  %v711_v35 = vstv %s2185_s17  ;;  %v696_v17 = vadd.f32 %v695_v50, %v693_v24  ;;  %v813_v24 = vadd.f32 %v812_v56, %v811_v57 }
  0x9e   : > { %s2229_s4 = sld [smem:[#allocation2 + %s451_s15]]  ;;  %s453_s12 = sadd.s32 74, %s1711_s26  ;;  %v712_v40 = vmul.f32 %v711_v35, %v1781_v14  ;;  %v714_v45 = vstv %s2190_s0  ;;  %v704_v50 = vmul.f32 %v703_v7, %v1885_v54  ;;  %v814_v63 = vmul.f32 %v2155_v33, %v2304_v39 }
  0x9f   : > { %s2237_s11 = sld [smem:[#allocation2 + %s453_s12]]  ;;  %s455_s25 = sadd.s32 75, %s1711_s26  ;;  %v710_v18 = vadd.f32 %v709_v34, %v707_v25  ;;  %v715_v62 = vmul.f32 %v714_v45, %v1803_v21  ;;  %v717_v8 = vstv %s2197_s1  ;;  %v701_v45 = vmul.f32 %v700_v26, %v1855_v41 }
  0xa0   : > { %s2242_s29 = sld [smem:[#allocation2 + %s455_s25]]  ;;  %s457_s17 = sadd.s32 76, %s1711_s26  ;;  %v718_v4 = vmul.f32 %v717_v8, %v1824_v30  ;;  %v720_v15 = vstv %s2204_s8 }
  0xa1   : > { %s2250_s27 = sld [smem:[#allocation2 + %s457_s17]]  ;;  %s459_s7 = sadd.s32 77, %s1711_s26  ;;  %v713_v55 = vadd.f32 %v712_v40, %v710_v18  ;;  %v721_v31 = vmul.f32 %v720_v15, %v1842_v37  ;;  %v723_v23 = vstv %s2209_s16  ;;  %v699_v40 = vadd.f32 %v698_v13, %v696_v17 }
  0xa2   : > { %s2260_s0 = sld [smem:[#allocation2 + %s459_s7]]  ;;  %s461_s24 = sadd.s32 78, %s1711_s26 }
  0xa3   : > { %s2271_s2 = sld [smem:[#allocation2 + %s461_s24]]  ;;  %s463_s1 = sadd.s32 79, %s1711_s26  ;;  %v716_v1 = vadd.f32 %v715_v62, %v713_v55  ;;  %v729_v16 = vstv %s2222_s9  ;;  %v724_v55 = vmul.f32 %v723_v23, %v1855_v41 }
  0xa4   : > { %s2276_s3 = sld [smem:[#allocation2 + %s463_s1]]  ;;  %s465_s10 = sadd.s32 80, %s1711_s26  ;;  %v730_v22 = vmul.f32 %v729_v16, %v1754_v5  ;;  %v731_v3 = vstv %s2229_s4 }
  0xa5   : > { %s2282_s13 = sld [smem:[#allocation2 + %s465_s10]]  ;;  %s467_s14 = sadd.s32 81, %s1711_s26  ;;  %v732_v29 = vmul.f32 %v731_v3, %v1756_v6  ;;  %v734_v61 = vstv %s2237_s11  ;;  %v719_v19 = vadd.f32 %v718_v4, %v716_v1  ;;  %v726_v4 = vstv %s2216_s20 }
  0xa6   : > { %s2289_s8 = sld [smem:[#allocation2 + %s467_s14]]  ;;  %s469_s9 = sadd.s32 82, %s1711_s26  ;;  %v735_v25 = vmul.f32 %v734_v61, %v1781_v14  ;;  %v737_v20 = vstv %s2242_s29  ;;  %v702_v1 = vadd.f32 %v701_v45, %v699_v40  ;;  %v2357_v40 = vadd.f32 1.0, %v2248_v52 }
  0xa7   : > { %s2295_s15 = sld [smem:[#allocation2 + %s469_s9]]  ;;  %s471_s6 = sadd.s32 83, %s1711_s26  ;;  %v733_v32 = vadd.f32 %v732_v29, %v730_v22  ;;  %v738_v34 = vmul.f32 %v737_v20, %v1803_v21  ;;  %v740_v35 = vstv %s2250_s27  ;;  %v722_v53 = vadd.f32 %v721_v31, %v719_v19 }
  0xa8   : > { %s2301_s22 = sld [smem:[#allocation2 + %s471_s6]]  ;;  %s473_s4 = sadd.s32 84, %s1711_s26  ;;  %v743_v46 = vstv %s2260_s0  ;;  %v741_v62 = vmul.f32 %v740_v35, %v1824_v30  ;;  %v727_v29 = vmul.f32 %v726_v4, %v1885_v54  ;;  %v892_v35 = vadd.f32 %v2269_v49, %v2258_v59 }
  0xa9   : > { %s2308_s12 = sld [smem:[#allocation2 + %s473_s4]]  ;;  %s475_s11 = sadd.s32 85, %s1711_s26  ;;  %v736_v18 = vadd.f32 %v735_v25, %v733_v32  ;;  %v746_v8 = vstv %s2271_s2  ;;  %v744_v56 = vmul.f32 %v743_v46, %v1842_v37  ;;  %v725_v7 = vadd.f32 %v724_v55, %v722_v53 }
  0xaa   : > { %s2313_s16 = sld [smem:[#allocation2 + %s475_s11]]  ;;  %s477_s25 = sadd.s32 86, %s1711_s26  ;;  %v747_v15 = vmul.f32 %v746_v8, %v1855_v41  ;;  %v749_v22 = vstv %s2276_s3  ;;  %v705_v59 = vadd.f32 %v704_v50, %v702_v1  ;;  %v815_v53 = vadd.f32 %v814_v63, %v813_v24 }
  0xab   : > { %s2320_s29 = sld [smem:[#allocation2 + %s477_s25]]  ;;  %s479_s17 = sadd.s32 87, %s1711_s26  ;;  %v739_v57 = vadd.f32 %v738_v34, %v736_v18  ;;  %v752_v2 = vstv %s2282_s13  ;;  %v750_v32 = vmul.f32 %v749_v22, %v1885_v54  ;;  %v2368_v49 = vadd.f32 %v727_v29, %v725_v7 }
  0xac   : > { %s2326_s27 = sld [smem:[#allocation2 + %s479_s17]]  ;;  %s481_s7 = sadd.s32 88, %s1711_s26  ;;  %v753_v16 = vmul.f32 %v752_v2, %v1754_v5  ;;  %v754_v17 = vstv %s2289_s8 }
  0xad   : > { %s2332_s0 = sld [smem:[#allocation2 + %s481_s7]]  ;;  %s483_s24 = sadd.s32 89, %s1711_s26  ;;  %v742_v13 = vadd.f32 %v741_v62, %v739_v57  ;;  %v755_v3 = vmul.f32 %v754_v17, %v1756_v6  ;;  %v757_v26 = vstv %s2295_s15  ;;  %v893_v62 = vmul.f32 %v2139_v27, %v2304_v39 }
  0xae   : > { %s2338_s20 = sld [smem:[#allocation2 + %s483_s24]]  ;;  %s485_s2 = sadd.s32 90, %s1711_s26  ;;  %v758_v61 = vmul.f32 %v757_v26, %v1781_v14  ;;  %v760_v19 = vstv %s2301_s22  ;;  %v819_v63 = vmul.f32 %v1981_v38, %v2368_v49 }
  0xaf   : > { %s2344_s1 = sld [smem:[#allocation2 + %s485_s2]]  ;;  %s487_s10 = sadd.s32 91, %s1711_s26  ;;  %v745_v31 = vadd.f32 %v744_v56, %v742_v13  ;;  %v756_v25 = vadd.f32 %v755_v3, %v753_v16  ;;  %v761_v20 = vmul.f32 %v760_v19, %v1803_v21  ;;  %v763_v23 = vstv %s2308_s12 }
  0xb0   : > { %s2349_s3 = sld [smem:[#allocation2 + %s487_s10]]  ;;  %s489_s13 = sadd.s32 92, %s1711_s26  ;;  %v766_v34 = vstv %s2313_s16  ;;  %v764_v18 = vmul.f32 %v763_v23, %v1824_v30  ;;  %v936_v19 = vsub.f32 1.0, %v2248_v52 }
  0xb1   : > { %s2359_s14 = sld [smem:[#allocation2 + %s489_s13]]  ;;  %s491_s8 = sadd.s32 93, %s1711_s26  ;;  %v748_v45 = vadd.f32 %v747_v15, %v745_v31  ;;  %v759_v46 = vadd.f32 %v758_v61, %v756_v25  ;;  %v769_v8 = vstv %s2320_s29  ;;  %v767_v4 = vmul.f32 %v766_v34, %v1842_v37 }
  0xb2   : > { %s2365_s9 = sld [smem:[#allocation2 + %s491_s8]]  ;;  %s493_s15 = sadd.s32 94, %s1711_s26  ;;  %v772_v57 = vstv %s2326_s27  ;;  %v770_v15 = vmul.f32 %v769_v8, %v1855_v41  ;;  %v894_v61 = vadd.f32 %v893_v62, %v892_v35 }
  0xb3   : > { %s2371_s6 = sld [smem:[#allocation2 + %s493_s15]]  ;;  %s495_s22 = sadd.s32 95, %s1711_s26  ;;  %v762_v55 = vadd.f32 %v761_v20, %v759_v46  ;;  %v775_v56 = vstv %s2332_s0  ;;  %v2380_v50 = vadd.f32 %v750_v32, %v748_v45  ;;  %v773_v13 = vmul.f32 %v772_v57, %v1885_v54 }
  0xb4   : > { %s302_s4 = sand.u32 1, %s1517_s19   ;;  %s2378_s12 = sld [smem:[#allocation2 + %s495_s22]]  ;;  %v776_v2 = vmul.f32 %v775_v56, %v1754_v5  ;;  %v777_v24 = vstv %s2338_s20  ;;  %v816_v20 = vadd.f32 %v815_v53, %v705_v59  ;;  %v916_v34 = vadd.f32 %v2357_v40, %v894_v61 }
  0xb5   : > { %s2387_s11 = sld [smem:[#allocation6 + %s1711_s26]]  ;;  %v765_v1 = vadd.f32 %v764_v18, %v762_v55  ;;  %v778_v16 = vmul.f32 %v777_v24, %v1756_v6  ;;  %v780_v17 = vstv %s2344_s1  ;;  %s2641_s16 = sadd.s32 1, %s1711_s26  ;;  %v820_v38 = vmul.f32 %v2022_v9, %v2380_v50 }
  0xb6   : > { %s2394_s25 = sld [smem:[#allocation6 + %s2641_s16]]  ;;  %v781_v5 = vmul.f32 %v780_v17, %v1781_v14  ;;  %v783_v22 = vstv %s2349_s3  ;;  %s2403_s29 = smul.u32 56, %s302_s4  ;;  %v910_v14 = vmul.f32 %v2034_v12, %v2368_v49  ;;  %v937_v56 = vadd.f32 %v936_v19, %v894_v61 }
  0xb7   : > { %v768_v3 = vadd.f32 %v767_v4, %v765_v1  ;;  %v779_v26 = vadd.f32 %v778_v16, %v776_v2  ;;  %v784_v6 = vmul.f32 %v783_v22, %v1803_v21  ;;  %v786_v7 = vstv %s2359_s14  ;;  %s2642_s17 = sadd.s32 2, %s1711_s26  ;;  %s1211_s7 = smul.u32 896, %s1525_s21 }
  0xb8   : > { %v789_v29 = vstv %s2365_s9  ;;  %v787_v25 = vmul.f32 %v786_v7, %v1824_v30  ;;  %v821_v32 = vadd.f32 %v820_v38, %v819_v63  ;;  %v911_v21 = vmul.f32 %v2082_v44, %v2380_v50  ;;  %s2422_s27 = sld [smem:[#allocation6 + %s2642_s17]]  ;;  %s2434_s26 = scalar_lea.vmem [#allocation12], %s2403_s29 }
  0xb9   : > { %v771_v9 = vadd.f32 %v770_v15, %v768_v3  ;;  %v782_v31 = vadd.f32 %v781_v5, %v779_v26  ;;  %v792_v23 = vstv %s2371_s6  ;;  %v790_v46 = vmul.f32 %v789_v29, %v1842_v37  ;;  %s1049_s0 = sshll.u32 %s2434_s26, 4  ;;  %s2546_s20 = scalar_lea.hbm %s2616_s5, %s1211_s7  ;;  %s2548_s0 = int_to_ptr.vmem [resolvable:$true] %s1049_s0 }
  0xba   : > { %v795_v18 = vstv %s2378_s12  ;;  %v912_v59 = vadd.f32 %v911_v21, %v910_v14  ;;  %v793_v53 = vmul.f32 %v792_v23, %v1855_v41  ;;  %v926_v37 = vsub.f32 %v2357_v40, %v894_v61  ;;  %s2566_s2 = scalar_lea.sflag [#allocation4], %s302_s4  ;;  %s1441_s1 = scalar_lea.vmem %s2548_s0, 896 }
  0xbb   : > { %v2416_v35 = vadd.f32 %v773_v13, %v771_v9  ;;  %v785_v45 = vadd.f32 %v784_v6, %v782_v31  ;;  %v809_v52 = vstv %s2387_s11  ;;  %v947_v2 = vsub.f32 %v936_v19, %v894_v61  ;;  %p1442_p8 = scmp.ne.s32.totalorder %s2548_s0, %s1441_s1  ;;  %s1543_s10 = smov [#allocation12]  }
  0xbc   : > { %v810_v30 = vadd.f32 %v809_v52, %v2246_v51  ;;  %v817_v62 = vstv %s2394_s25  ;;  %v796_v41 = vmul.f32 %v795_v18, %v1885_v54  ;;  %v875_v54 = vmul.f32 %v2015_v58, %v1970_v28  ;;  %s1445_s3 = sshll.u32 %s1543_s10, 4  ;;  %s1446_s3 = int_to_ptr.vmem [resolvable:$false] %s1445_s3 }
  0xbd   : > { %v788_v8 = vadd.f32 %v787_v25, %v785_v45  ;;  %v818_v55 = vadd.f32 %v817_v62, %v816_v20  ;;  %v822_v4 = vmul.f32 %v2155_v33, %v2416_v35  ;;  %v913_v57 = vmul.f32 %v2195_v0, %v2416_v35  ;;  %p1443_p10 = pnand %p1442_p8, %p1616_p4  ;;  %s1447_s13 = scalar_lea.vmem %s1446_s3, 1792 }
  0xbe   : > { %1021 = vst [vmem:[%s2434_s26] sm:$0xff] %v810_v30  ;;  %v825_v13 = vstv %s2422_s27  ;;  %v876_v7 = vmul.f32 %v2076_v43, %v2029_v48  ;;  %v880_v29 = vmul.f32 %v2034_v12, %v1970_v28  ;;  %v881_v61 = vmul.f32 %v2082_v44, %v2029_v48  ;;  %p1448_p13 = scmp.lt.s32.totalorder %s2548_s0, %s1446_s3  ;;  %p1449_p0 = scmp.lt.s32.totalorder %s1447_s13, %s1441_s1 }
  0xbf   : > { %v791_v51 = vadd.f32 %v790_v46, %v788_v8  ;;  %1201 = vst [vmem:[%s2434_s26 + $0x8] sm:$0xff] %v818_v55  ;;  %v914_v24 = vadd.f32 %v913_v57, %v912_v59  ;;  %v823_v33 = vadd.f32 %v822_v4, %v821_v32  ;;  %v885_v14 = vmul.f32 %v2024_v11, %v2212_v47  ;;  %p1444_p11 = pneg %p1443_p10 }
  0xc0   : > { %v895_v19 = vmul.f32 %v2034_v12, %v2212_v47  ;;  %v896_v9 = vmul.f32 %v2082_v44, %v2232_v36  ;;  %v905_v25 = vmul.f32 %v2015_v58, %v2368_v49  ;;  %v906_v18 = vmul.f32 %v2076_v43, %v2380_v50  ;;  %p1450_p6 = por %p1449_p0, %p1448_p13 }
  0xc1   : > { %v794_v63 = vadd.f32 %v793_v53, %v791_v51  ;;  %v917_v1 = vadd.f32 %v916_v34, %v914_v24  ;;  %v927_v15 = vsub.f32 %v926_v37, %v914_v24  ;;  %v938_v16 = vsub.f32 %v937_v56, %v914_v24 }
  0xc2   : > { %v948_v40 = vadd.f32 %v947_v2, %v914_v24  ;;  %v886_v37 = vmul.f32 %v2074_v42, %v2232_v36  ;;  %v900_v56 = vmul.f32 %v2024_v11, %v2368_v49  ;;  %v901_v2 = vmul.f32 %v2074_v42, %v2380_v50  ;;  %p1451_p7 = pnand %p1450_p6, %p1444_p11 }
  0xc3   : > { %v797_v17 = vadd.f32 %v796_v41, %v794_v63  ;;  %v918_v5 = vmax.f32 %v917_v1, 0.0  ;;  %v928_v22 = vmax.f32 %v927_v15, 0.0  ;;  %v939_v38 = vmax.f32 %v938_v16, 0.0 }
  0xc4   : > { %v949_v26 = vmax.f32 %v948_v40, 0.0  ;;  %v878_v36 = vmul.f32 %v2139_v27, %v2146_v60  ;;  %v897_v11 = vadd.f32 %v896_v9, %v895_v19  ;;  %v898_v42 = vmul.f32 %v2195_v0, %v2304_v39 }
  0xc5   : > { %v824_v3 = vadd.f32 %v823_v33, %v797_v17  ;;  %1325 = vrsqrt.f32 %v918_v5  ;;  %vm921_vm0 = vcmp.eq.f32.partialorder %v918_v5, inf  ;;  %vm923_vm1 = vcmp.eq.f32.partialorder %v918_v5, 0.0 }
  0xc6   : > { %1327 = vrsqrt.f32 %v928_v22  ;;  %v924_v20 = vand.u32 2147483648, %v918_v5  ;;  %vm931_vm2 = vcmp.eq.f32.partialorder %v928_v22, inf  ;;  %vm933_vm3 = vcmp.eq.f32.partialorder %v928_v22, 0.0 }
  0xc7   : > { %v826_v6 = vadd.f32 %v825_v13, %v824_v3  ;;  %1329 = vrsqrt.f32 %v939_v38  ;;  %v934_v48 = vand.u32 2147483648, %v928_v22  ;;  %vm942_vm4 = vcmp.eq.f32.partialorder %v939_v38, inf }
  0xc8   : > { %1331 = vrsqrt.f32 %v949_v26  ;;  %vm944_vm5 = vcmp.eq.f32.partialorder %v939_v38, 0.0  ;;  %v945_v12 = vand.u32 2147483648, %v939_v38  ;;  %vm952_vm6 = vcmp.eq.f32.partialorder %v949_v26, inf }
  0xc9   : > { %1202 = vst [vmem:[%s2434_s26 + $0x10] sm:$0xff] %v826_v6  ;;  %v955_v45 = vand.u32 2147483648, %v949_v26  ;;  %vm954_vm7 = vcmp.eq.f32.partialorder %v949_v26, 0.0  ;;  %v907_v49 = vadd.f32 %v906_v18, %v905_v25  ;;  %v908_v50 = vmul.f32 %v2139_v27, %v2416_v35 }
  0xca   : > { %v877_v24 = vadd.f32 %v876_v7, %v875_v54  ;;  %v882_v63 = vadd.f32 %v881_v61, %v880_v29  ;;  %v887_v33 = vadd.f32 %v886_v37, %v885_v14  ;;  %v888_v1 = vmul.f32 %v2130_v10, %v2304_v39 }
  0xcb   : > { %v883_v15 = vmul.f32 %v2195_v0, %v2146_v60  ;;  %v902_v16 = vadd.f32 %v901_v2, %v900_v56  ;;  %v903_v40 = vmul.f32 %v2130_v10, %v2416_v35  ;;  %v899_v17 = vadd.f32 %v898_v42, %v897_v11 }
  0xcc   : > { %v909_v27 = vadd.f32 %v908_v50, %v907_v49  ;;  %v879_v13 = vadd.f32 %v878_v36, %v877_v24 }
  0xcd   : > { %v884_v39 = vadd.f32 %v883_v15, %v882_v63 }
  0xce   : > { %v985_v0 = vsub.f32 %v909_v27, %v899_v17 }
  0xd2   : > { %v1326_v31 = vpop.eup %1325 }
  0xd3   : > { %v1328_v28 = vpop.eup %1327  ;;  %v920_v23 = vmul.f32 %v1326_v31, %v918_v5  ;;  %v1008_v31 = vadd.f32 %v909_v27, %v899_v17 }
  0xd4   : > { %v1330_v32 = vpop.eup %1329  ;;  %v930_v21 = vmul.f32 %v1328_v28, %v928_v22 }
  0xd5   : > { %v1332_v47 = vpop.eup %1331  ;;  %v922_v34 = vsel %vm921_vm0, %v918_v5, %v920_v23  ;;  %v941_v44 = vmul.f32 %v1330_v32, %v939_v38  ;;  %v889_v5 = vadd.f32 %v888_v1, %v887_v33 }
  0xd6   : > { %v925_v58 = vsel %vm923_vm1, %v924_v20, %v922_v34  ;;  %v932_v46 = vsel %vm931_vm2, %v928_v22, %v930_v21  ;;  %v951_v52 = vmul.f32 %v1332_v47, %v949_v26 }
  0xd7   : > { %v935_v30 = vsel %vm933_vm3, %v934_v48, %v932_v46  ;;  %v943_v62 = vsel %vm942_vm4, %v939_v38, %v941_v44  ;;  %v957_v59 = vmax.f32 %v925_v58, 0.1  ;;  %v904_v38 = vadd.f32 %v903_v40, %v902_v16 }
  0xd8   : > { %v2461_v8 = vsel %vm944_vm5, %v945_v12, %v943_v62  ;;  %v953_v53 = vsel %vm952_vm6, %v949_v26, %v951_v52  ;;  %v960_v55 = vmax.f32 %v935_v30, 0.1  ;;  %vm969_vm8 = vcmp.ge.f32.partialorder %v925_v58, %v935_v30 }
  0xd9   : > { %v2463_v4 = vsel %vm954_vm7, %v955_v45, %v953_v53  ;;  %1333 = vrcp.f32 %v957_v59  ;;  %v963_v57 = vmax.f32 %v2461_v8, 0.1  ;;  %vm970_vm9 = vcmp.ge.f32.partialorder %v925_v58, %v2461_v8 }
  0xda   : > { %1335 = vrcp.f32 %v960_v55  ;;  %v966_v43 = vmax.f32 %v2463_v4, 0.1  ;;  %vm971_vm10 = vmand %vm969_vm8, %vm970_vm9  ;;  %vm972_vm11 = vcmp.ge.f32.partialorder %v925_v58, %v2463_v4  ;;  %vm975_vm15 = vcmp.ge.f32.partialorder %v935_v30, %v2461_v8 }
  0xdb   : > { %1337 = vrcp.f32 %v963_v57  ;;  %vm2475_vm12 = vmand %vm971_vm10, %vm972_vm11  ;;  %vm977_vm1 = vcmp.ge.f32.partialorder %v935_v30, %v2463_v4  ;;  %v983_v60 = vmul.f32 %v925_v58, %v925_v58  ;;  %v989_v3 = vsub.f32 %v889_v5, %v879_v13 }
  0xdc   : > { %1339 = vrcp.f32 %v966_v43  ;;  %vm2484_vm14 = vmxor %vm2475_vm12, %vm1542_vm13  ;;  %v995_v26 = vmul.f32 %v935_v30, %v935_v30  ;;  %v987_v7 = vsub.f32 %v884_v39, %v904_v38  ;;  %v997_v29 = vadd.f32 %v889_v5, %v879_v13 }
  0xdd   : > { %vm976_vm0 = vmand %vm2484_vm14, %vm975_vm15  ;;  %v1006_v61 = vmul.f32 %v2461_v8, %v2461_v8  ;;  %vm981_vm5 = vcmp.ge.f32.partialorder %v2461_v8, %v2463_v4  ;;  %v999_v9 = vadd.f32 %v904_v38, %v884_v39  ;;  %v1016_v48 = vmul.f32 %v2463_v4, %v2463_v4 }
  0xde   : > { %vm2502_vm2 = vmand %vm976_vm0, %vm977_vm1 }
  0xdf   : > { %vm2509_vm3 = vmxor %vm2502_vm2, %vm1542_vm13 }
  0xe0   : > { %vm980_vm4 = vmand %vm2484_vm14, %vm2509_vm3 }
  0xe1   : > { %vm2523_vm6 = vmand %vm980_vm4, %vm981_vm5 }
  0xe6   : > { %v1334_v35 = vpop.eup %1333 }
  0xe7   : > { %v1336_v6 = vpop.eup %1335  ;;  %v959_v54 = vmul.f32 0.5, %v1334_v35 }
  0xe8   : > { %v1338_v14 = vpop.eup %1337  ;;  %v962_v19 = vmul.f32 0.5, %v1336_v6 }
  0xe9   : > { %v1340_v25 = vpop.eup %1339  ;;  %v965_v20 = vmul.f32 0.5, %v1338_v14  ;;  %v984_v28 = vmul.f32 %v983_v60, %v959_v54  ;;  %v994_v23 = vmul.f32 %v985_v0, %v959_v54  ;;  %v1004_v47 = vmul.f32 %v987_v7, %v959_v54 }
  0xea   : > { %v968_v32 = vmul.f32 0.5, %v1340_v25  ;;  %v986_v21 = vmul.f32 %v985_v0, %v962_v19  ;;  %v996_v12 = vmul.f32 %v995_v26, %v962_v19  ;;  %v1005_v58 = vmul.f32 %v997_v29, %v962_v19 }
  0xeb   : > { %v988_v44 = vmul.f32 %v987_v7, %v965_v20  ;;  %v998_v45 = vmul.f32 %v997_v29, %v965_v20  ;;  %v1007_v46 = vmul.f32 %v1006_v61, %v965_v20  ;;  %v1014_v62 = vmul.f32 %v999_v9, %v962_v19 }
  0xec   : > { %v990_v52 = vmul.f32 %v989_v3, %v968_v32  ;;  %v1000_v18 = vmul.f32 %v999_v9, %v968_v32  ;;  %v1009_v30 = vmul.f32 %v1008_v31, %v968_v32  ;;  %v1013_v59 = vmul.f32 %v989_v3, %v959_v54 }
  0xed   : > { %v1015_v8 = vmul.f32 %v1008_v31, %v965_v20  ;;  %v1017_v53 = vmul.f32 %v1016_v48, %v968_v32 }
  0xee   : > { %v991_v55 = vsel %vm2523_vm6, %v988_v44, %v990_v52  ;;  %v1001_v4 = vsel %vm2523_vm6, %v998_v45, %v1000_v18  ;;  %v1010_v57 = vsel %vm2523_vm6, %v1007_v46, %v1009_v30 }
  0xef   : > { %v992_v37 = vsel %vm2502_vm2, %v986_v21, %v991_v55  ;;  %v1002_v43 = vsel %vm2502_vm2, %v996_v12, %v1001_v4  ;;  %v1011_v56 = vsel %vm2502_vm2, %v1005_v58, %v1010_v57  ;;  %v1018_v2 = vsel %vm2523_vm6, %v1015_v8, %v1017_v53 }
  0xf0   : > { %v993_v36 = vsel %vm2475_vm12, %v984_v28, %v992_v37  ;;  %v1003_v41 = vsel %vm2475_vm12, %v994_v23, %v1002_v43  ;;  %v1012_v11 = vsel %vm2475_vm12, %v1004_v47, %v1011_v56  ;;  %v1019_v42 = vsel %vm2502_vm2, %v1014_v62, %v1018_v2 }
  0xf1   : > { %v1020_v49 = vsel %vm2475_vm12, %v1013_v59, %v1019_v42  ;;  %1203 = vst [vmem:[%s2434_s26 + $0x18] sm:$0xff] %v993_v36  ;;  %1204 = vst [vmem:[%s2434_s26 + $0x20] sm:$0xff] %v1003_v41 }
  0xf2   : > { %1205 = vst [vmem:[%s2434_s26 + $0x28] sm:$0xff] %v1012_v11  ;;  %1206 = vst [vmem:[%s2434_s26 + $0x30] sm:$0xff] %v1020_v49 }
  0xf3   : > { %1454 = shalt.err (!%p1451_p7)
}
  0xf4   : > { %s1455_s14 = scalar_lea.hbm %s2546_s20, 896  ;;  %s1459_s15 = scalar_lea.hbm %s2616_s5, 1792 }
  0xf5   : > { %p1456_p9 = scmp.ne.s32.totalorder %s2546_s20, %s1455_s14  ;;  %p1460_p3 = scmp.lt.s32.totalorder %s2546_s20, %s2616_s5 }
  0xf6   : > { %p1461_p2 = scmp.lt.s32.totalorder %s1459_s15, %s1455_s14 }
  0xf7   : > { %p1457_p12 = pnand %p1456_p9, %p1616_p4 }
  0xf8   : > { %p1462_p5 = por %p1461_p2, %p1460_p3 }
  0xf9   : > { %p1458_p1 = pneg %p1457_p12 }
  0xfb   : > { %p1463_p8 = pnand %p1462_p5, %p1458_p1 }
  0xfd   : > { %1466 = shalt.err (!%p1463_p8)
}
  0xfe   : > { %s1544_s4 = smov 128   ;;  %s1545_s12 = smov 8  }
  0xff   : > { %1232 = dma.vmem_to_hbm [thread:$0]  (%p1616_p4), %s2548_s0, 896, %s2546_s20, %s2566_s2, %s1544_s4, %s1544_s4, %s1545_s12  }
 0x100 PF: > { %p1264_p10 = scmp.ge.s32.totalorder %s1533_s23, 2  ;;  %s1064_s11 = sand.u32 1, %s1513_s18  }
 0x101   : > { %p2653_p11 = scmp.ne.s32.totalorder %s2631_s30, 0  ;;  %s1065_s16 = scalar_lea.sflag [#allocation4], %s1064_s11 }
 0x103   : > { %p1251_p13 = pnand %p1264_p10, %p2653_p11 }
 0x105   : > { %p1252_p0 = pneg %p1251_p13 }
 0x107   : > { %1508 = dma.done.wait (%p1252_p0), %s1065_s16, 896  }
 0x108   : > { %1510 = vsyncadd (%p1252_p0), %s1065_s16, 4294966400  ;;  %s22_s23 = sadd.s32 1, %s1533_s23   ;;  %s2654_s25 = sld [smem:[#allocation18_spill]] }
 0x109   : > { %p19_p6 = scmp.ge.s32.totalorder %s22_s23, 4   ;;  %s2655_s20 = sld [smem:[#allocation21_spill]] }
 0x10a   : > { %s2656_s21 = sld [smem:[#allocation19_spill]]  ;;  %s2658_s18 = smov %s1517_s19 }
 0x10b   : > { %s2657_s22 = sld [smem:[#allocation20_spill]]  ;;  %21 = sbr.rel (!%p19_p6) target bundleno = 14 (0xe), region = 115 }
 0x10e   : > { %s2659_s19 = smov %s2654_s25 }
 0x110   :  { %1070 = vsyncpa [#allocation3], 1 }
 0x111   :  { %1072 = vsyncpa [#allocation3 + $0x1], 1 }
 0x112   :  { %1073 = vsyncpa [#allocation10], 1 }
 0x113   :  { %1074 = vsyncpa [#allocation4], 1 }
 0x114   :  { %1076 = vsyncpa [#allocation4 + $0x1], 1 }
 0x115   :  { %1077 = vsyncpa [#allocation5], 1 }
 0x116   :  { %1079 = vsyncpa [#allocation5 + $0x1], 1 }
 0x117   :  { %1080 = vsyncpa [#allocation7], 1 }

</bundles_post_ra>
